<compile_context>
chip_gen: v6e
topology: v6e:2x2x1
jax: 0.10.0
libtpu: 0.0.40
codegen_flags: <defaults>
</compile_context>

<pallas_src>
import math

import jax
import jax.numpy as jnp
from jax.experimental import pallas as pl
from jax.experimental.pallas import tpu as pltpu

_VMEM_LIMIT = 32 * 1024 * 1024   # comfortably above our tile needs, <= every gen's VMEM


def _pick_tile(m, cap=4096):
    """Row-tile size for the M (batch*spatial) axis.

    - never full-extent for large m (keeps tiles << VMEM, enables pipelining);
    - aims for >= 2 grid steps so v7x's two TensorCores both get work;
    - multiples of 16 rows (bf16 sublane packing); ragged last block is legal.
    """
    if m <= 16:
        return m                       # tiny input: single full-extent block
    half = -(-m // 2)                  # ceil(m / 2)  -> at least 2 grid steps
    tile = -(-half // 16) * 16         # round up to a multiple of 16
    return min(cap, tile)


# --------------------------------------------------------------------------
# Kernel 1/2: fused conv + bias + ReLU + 2x2 maxpool (phase-split im2col)
# --------------------------------------------------------------------------
def _conv_relu_pool_kernel(pat_ref, w_ref, b_ref, o_ref):
    # pat_ref: (4, tm, K) bf16 -- four pooling phases of the im2col patches.
    # w_ref:   (K, N)   bf16;  b_ref: (1, N) f32;  o_ref: (tm, N) bf16.
    w = w_ref[...]
    m = jnp.dot(pat_ref[0], w, preferred_element_type=jnp.float32)
    for ph in range(1, 4):
        m = jnp.maximum(m, jnp.dot(pat_ref[ph], w,
                                   preferred_element_type=jnp.float32))
    o_ref[...] = jnp.maximum(m + b_ref[...], 0.0).astype(o_ref.dtype)


def conv_relu_pool(pat4, w, b):
    """pat4:(4,M,K) bf16, w:(K,N) bf16, b:(1,N) f32 -> (M,N) bf16 pooled+ReLU."""
    _, M, K = pat4.shape
    N = w.shape[1]
    tm = _pick_tile(M)
    grid = (pl.cdiv(M, tm),)
    cost = pl.CostEstimate(
        flops=2 * 4 * M * K * N + 5 * M * N,
        transcendentals=0,
        bytes_accessed=4 * M * K * 2 + K * N * 2 + M * N * 2 + 4 * N,
    )
    return pl.pallas_call(
        _conv_relu_pool_kernel,
        out_shape=jax.ShapeDtypeStruct((M, N), jnp.bfloat16),
        grid=grid,
        in_specs=[
            pl.BlockSpec((4, tm, K), lambda i: (0, i, 0)),
            pl.BlockSpec((K, N), lambda i: (0, 0)),
            pl.BlockSpec((1, N), lambda i: (0, 0)),
        ],
        out_specs=pl.BlockSpec((tm, N), lambda i: (i, 0)),
        compiler_params=pltpu.CompilerParams(
            dimension_semantics=("parallel",),
            vmem_limit_bytes=_VMEM_LIMIT,
        ),
        cost_estimate=cost,
    )(pat4, w, b)


# --------------------------------------------------------------------------
# Kernel 3: fused head  conv3(=400x120 matmul) + ReLU + fc1 + ReLU + fc2
# --------------------------------------------------------------------------
def _head_kernel(x_ref, w3_ref, b3_ref, w4_ref, b4_ref, w5_ref, b5_ref, o_ref):
    h = jnp.dot(x_ref[...], w3_ref[...], preferred_element_type=jnp.float32)
    h = jnp.maximum(h + b3_ref[...], 0.0)                  # conv3 + Dropout(id) + ReLU
    h = jnp.dot(h.astype(jnp.bfloat16), w4_ref[...],
                preferred_element_type=jnp.float32)
    h = jnp.maximum(h + b4_ref[...], 0.0)                  # fc1 + ReLU
    o = jnp.dot(h.astype(jnp.bfloat16), w5_ref[...],
                preferred_element_type=jnp.float32)
    o_ref[...] = (o + b5_ref[...]).astype(o_ref.dtype)     # fc2


def head(x2d, w3, b3, w4, b4, w5, b5):
    """x2d:(B,400) bf16 -> logits (B,10) f32; weights resident, B tiled."""
    M, K = x2d.shape
    tm = _pick_tile(M)
    grid = (pl.cdiv(M, tm),)
    wbytes = (K * 120 + 120 * 84 + 84 * 10) * 2
    cost = pl.CostEstimate(
        flops=2 * M * (K * 120 + 120 * 84 + 84 * 10),
        transcendentals=0,
        bytes_accessed=M * K * 2 + wbytes + M * 10 * 4,
    )
    return pl.pallas_call(
        _head_kernel,
        out_shape=jax.ShapeDtypeStruct((M, 10), jnp.float32),
        grid=grid,
        in_specs=[
            pl.BlockSpec((tm, K), lambda i: (i, 0)),
            pl.BlockSpec((K, 120), lambda i: (0, 0)),
            pl.BlockSpec((1, 120), lambda i: (0, 0)),
            pl.BlockSpec((120, 84), lambda i: (0, 0)),
            pl.BlockSpec((1, 84), lambda i: (0, 0)),
            pl.BlockSpec((84, 10), lambda i: (0, 0)),
            pl.BlockSpec((1, 10), lambda i: (0, 0)),
        ],
        out_specs=pl.BlockSpec((tm, 10), lambda i: (i, 0)),
        compiler_params=pltpu.CompilerParams(
            dimension_semantics=("parallel",),
            vmem_limit_bytes=_VMEM_LIMIT,
        ),
        cost_estimate=cost,
    )(x2d, w3, b3, w4, b4, w5, b5)


# --------------------------------------------------------------------------
# Host-side glue: phase-split im2col (XLA ops, fused by the compiler)
# --------------------------------------------------------------------------
def _im2col_pool_phases(x_nhwc, kh, kw, padding):
    """im2col patch matrix split into the four 2x2-maxpool phases.

    Returns ((4, B*Hp*Wp, kh*kw*Cin) bf16, Hp, Wp); K-order is (di, dj, ci);
    phase index 2*a+b holds patches of conv-output positions (2p+a, 2q+b).
    """
    x = x_nhwc.astype(jnp.bfloat16)
    B, H, W, C = x.shape
    if padding:
        x = jnp.pad(x, ((0, 0), (padding, padding), (padding, padding), (0, 0)))
    Ho = H + 2 * padding - kh + 1
    Wo = W + 2 * padding - kw + 1
    Hp, Wp = Ho // 2, Wo // 2
    K = kh * kw * C
    pat = jnp.concatenate(
        [x[:, di:di + Ho, dj:dj + Wo, :] for di in range(kh) for dj in range(kw)],
        axis=-1)                                           # (B, Ho, Wo, K)
    phases = [pat[:, a::2, b::2, :].reshape(B * Hp * Wp, K)
              for a in (0, 1) for b in (0, 1)]
    return jnp.stack(phases, axis=0), Hp, Wp


# --------------------------------------------------------------------------
# Parameters
# --------------------------------------------------------------------------
def init_params(key):
    """PyTorch-default-style uniform(-1/sqrt(fan_in), 1/sqrt(fan_in)) init."""
    def uinit(k, shape, fan_in):
        bound = 1.0 / math.sqrt(fan_in)
        return jax.random.uniform(k, shape, jnp.float32, -bound, bound)

    ks = jax.random.split(key, 10)
    return {
        "conv1_w": uinit(ks[0], (6, 1, 5, 5), 1 * 25),
        "conv1_b": uinit(ks[1], (6,), 1 * 25),
        "conv2_w": uinit(ks[2], (16, 6, 5, 5), 6 * 25),
        "conv2_b": uinit(ks[3], (16,), 6 * 25),
        "conv3_w": uinit(ks[4], (120, 16, 5, 5), 16 * 25),
        "conv3_b": uinit(ks[5], (120,), 16 * 25),
        "fc1_w": uinit(ks[6], (84, 120), 120),
        "fc1_b": uinit(ks[7], (84,), 120),
        "fc2_w": uinit(ks[8], (10, 84), 84),
        "fc2_b": uinit(ks[9], (10,), 84),
    }


def prepare_params(params):
    """One-time weight repack (transposes / reshapes / bf16 casts hoisted out
    of the jitted forward).  K-order matches the im2col (di, dj, ci) order."""
    w1 = jnp.transpose(params["conv1_w"], (2, 3, 1, 0)).reshape(25, 6)
    w2 = jnp.transpose(params["conv2_w"], (2, 3, 1, 0)).reshape(150, 16)
    w3 = jnp.transpose(params["conv3_w"], (2, 3, 1, 0)).reshape(400, 120)
    return {
        "w1": w1.astype(jnp.bfloat16),
        "b1": params["conv1_b"].reshape(1, 6).astype(jnp.float32),
        "w2": w2.astype(jnp.bfloat16),
        "b2": params["conv2_b"].reshape(1, 16).astype(jnp.float32),
        "w3": w3.astype(jnp.bfloat16),
        "b3": params["conv3_b"].reshape(1, 120).astype(jnp.float32),
        "w4": params["fc1_w"].T.astype(jnp.bfloat16),
        "b4": params["fc1_b"].reshape(1, 84).astype(jnp.float32),
        "w5": params["fc2_w"].T.astype(jnp.bfloat16),
        "b5": params["fc2_b"].reshape(1, 10).astype(jnp.float32),
    }


# --------------------------------------------------------------------------
# DropNet forward (inference mode: Dropout == identity)
# --------------------------------------------------------------------------
@jax.jit
def dropnet_forward(packed, x_nchw):
    B = x_nchw.shape[0]
    x = jnp.transpose(x_nchw, (0, 2, 3, 1))                    # NCHW -> NHWC (B,28,28,1)

    # Stage 1: conv(1->6,k5,pad2) + ReLU + Dropout(id) + maxpool2  (one kernel)
    pat1, hp1, wp1 = _im2col_pool_phases(x, 5, 5, 2)            # (4, B*196, 25)
    y1 = conv_relu_pool(pat1, packed["w1"], packed["b1"])       # (B*196, 6) bf16
    y1 = y1.reshape(B, hp1, wp1, 6)                             # (B,14,14,6)

    # Stage 2: conv(6->16,k5) + ReLU + Dropout(id) + maxpool2    (one kernel)
    pat2, hp2, wp2 = _im2col_pool_phases(y1, 5, 5, 0)           # (4, B*25, 150)
    y2 = conv_relu_pool(pat2, packed["w2"], packed["b2"])       # (B*25, 16) bf16

    # Head: conv(16->120, full 5x5) + Dropout(id) + ReLU + fc1 + ReLU + fc2
    x3 = y2.reshape(B, hp2 * wp2 * 16)                          # (B, 400) == NHWC flatten
    return head(x3, packed["w3"], packed["b3"], packed["w4"], packed["b4"],
                packed["w5"], packed["b5"])                     # (B, 10) f32


# --------------------------------------------------------------------------
# Pure-JAX reference (f32) for a correctness check
# --------------------------------------------------------------------------
def _reference_forward(params, x_nchw):
    def conv(x, w, b, pad):
        y = jax.lax.conv_general_dilated(
            x, w, window_strides=(1, 1), padding=[(pad, pad), (pad, pad)],
            dimension_numbers=("NCHW", "OIHW", "NCHW"))
        return y + b.reshape(1, -1, 1, 1)

    def pool(x):
        return jax.lax.reduce_window(x, -jnp.inf, jax.lax.max,
                                     (1, 1, 2, 2), (1, 1, 2, 2), "VALID")

    x = x_nchw.astype(jnp.float32)
    x = pool(jax.nn.relu(conv(x, params["conv1_w"], params["conv1_b"], 2)))
    x = pool(jax.nn.relu(conv(x, params["conv2_w"], params["conv2_b"], 0)))
    x = jax.nn.relu(conv(x, params["conv3_w"], params["conv3_b"], 0))
    x = x.reshape(x.shape[0], -1)
    x = jax.nn.relu(x @ params["fc1_w"].T + params["fc1_b"])
    return x @ params["fc2_w"].T + params["fc2_b"]


if __name__ == "__main__":
    key = jax.random.PRNGKey(0)
    pkey, xkey = jax.random.split(key)
    params = init_params(pkey)
    packed = prepare_params(params)        # one-time repack, outside the jitted forward
    # LeNet-style input: batch=2, 1 channel, 28x28 (so conv3's 5x5 covers the
    # whole pooled map and the flatten yields exactly 120 features).
    x = jax.random.normal(xkey, (2, 1, 28, 28), dtype=jnp.float32)

    out = jax.block_until_ready(dropnet_forward(packed, x))
    assert out.shape == (2, 10), out.shape
    assert bool(jnp.all(jnp.isfinite(out)))

    # bf16 matmuls (f32 accumulate) vs f32 reference -> loose tolerance.
    ref = jax.block_until_ready(_reference_forward(params, x))
    err = float(jnp.max(jnp.abs(out - ref)))
    assert bool(jnp.allclose(out, ref, atol=8e-2, rtol=8e-2)), err

    print("KERNEL_OK")
</pallas_src>

<mosaic_0001>
module attributes {stable_mosaic.version = 11 : i64} {
  func.func @_conv_relu_pool_kernel(%arg0: i32, %arg1: memref<4x208x25xbf16, #tpu.memory_space<vmem>>, %arg2: memref<25x6xbf16, #tpu.memory_space<vmem>>, %arg3: memref<1x6xf32, #tpu.memory_space<vmem>>, %arg4: memref<208x6xbf16, #tpu.memory_space<vmem>>) attributes {dimension_semantics = [#tpu.dimension_semantics<parallel>], iteration_bounds = array<i64: 2>, scalar_prefetch = 0 : i64, scratch_operands = 0 : i64, tpu.core_type = #tpu.core_type<tc>, window_params = [{transform_indices = @transform_0, window_bounds = array<i64: 4, 208, 25>}, {pipeline_mode = #tpu.pipeline_mode<synchronous>, transform_indices = @transform_1, window_bounds = array<i64: 25, 6>}, {pipeline_mode = #tpu.pipeline_mode<synchronous>, transform_indices = @transform_2, window_bounds = array<i64: 1, 6>}, {transform_indices = @transform_3, window_bounds = array<i64: 208, 6>}]} {
    %c0 = arith.constant 0 : index
    %c0_0 = arith.constant 0 : index
    %0 = vector.load %arg2[%c0, %c0_0] : memref<25x6xbf16, #tpu.memory_space<vmem>>, vector<25x6xbf16>
    %c0_1 = arith.constant 0 : index
    %c0_2 = arith.constant 0 : index
    %c0_3 = arith.constant 0 : index
    %1 = vector.load %arg1[%c0_1, %c0_2, %c0_3] : memref<4x208x25xbf16, #tpu.memory_space<vmem>>, vector<1x208x25xbf16>
    %2 = vector.shape_cast %1 : vector<1x208x25xbf16> to vector<208x25xbf16>
    %cst = arith.constant dense<0.000000e+00> : vector<208x6xf32>
    %3 = tpu.matmul %2, %0, %cst {dimension_numbers = #tpu.dot_dimension_numbers<[1], [0], [0], [1], [0, 0, 1, 1], [], []>} : vector<208x25xbf16>, vector<25x6xbf16>, vector<208x6xf32> -> vector<208x6xf32>
    %c1 = arith.constant 1 : index
    %c0_4 = arith.constant 0 : index
    %c0_5 = arith.constant 0 : index
    %4 = vector.load %arg1[%c1, %c0_4, %c0_5] : memref<4x208x25xbf16, #tpu.memory_space<vmem>>, vector<1x208x25xbf16>
    %5 = vector.shape_cast %4 : vector<1x208x25xbf16> to vector<208x25xbf16>
    %cst_6 = arith.constant dense<0.000000e+00> : vector<208x6xf32>
    %6 = tpu.matmul %5, %0, %cst_6 {dimension_numbers = #tpu.dot_dimension_numbers<[1], [0], [0], [1], [0, 0, 1, 1], [], []>} : vector<208x25xbf16>, vector<25x6xbf16>, vector<208x6xf32> -> vector<208x6xf32>
    %7 = arith.maximumf %3, %6 : vector<208x6xf32>
    %c2 = arith.constant 2 : index
    %c0_7 = arith.constant 0 : index
    %c0_8 = arith.constant 0 : index
    %8 = vector.load %arg1[%c2, %c0_7, %c0_8] : memref<4x208x25xbf16, #tpu.memory_space<vmem>>, vector<1x208x25xbf16>
    %9 = vector.shape_cast %8 : vector<1x208x25xbf16> to vector<208x25xbf16>
    %cst_9 = arith.constant dense<0.000000e+00> : vector<208x6xf32>
    %10 = tpu.matmul %9, %0, %cst_9 {dimension_numbers = #tpu.dot_dimension_numbers<[1], [0], [0], [1], [0, 0, 1, 1], [], []>} : vector<208x25xbf16>, vector<25x6xbf16>, vector<208x6xf32> -> vector<208x6xf32>
    %11 = arith.maximumf %7, %10 : vector<208x6xf32>
    %c3 = arith.constant 3 : index
    %c0_10 = arith.constant 0 : index
    %c0_11 = arith.constant 0 : index
    %12 = vector.load %arg1[%c3, %c0_10, %c0_11] : memref<4x208x25xbf16, #tpu.memory_space<vmem>>, vector<1x208x25xbf16>
    %13 = vector.shape_cast %12 : vector<1x208x25xbf16> to vector<208x25xbf16>
    %cst_12 = arith.constant dense<0.000000e+00> : vector<208x6xf32>
    %14 = tpu.matmul %13, %0, %cst_12 {dimension_numbers = #tpu.dot_dimension_numbers<[1], [0], [0], [1], [0, 0, 1, 1], [], []>} : vector<208x25xbf16>, vector<25x6xbf16>, vector<208x6xf32> -> vector<208x6xf32>
    %15 = arith.maximumf %11, %14 : vector<208x6xf32>
    %c0_13 = arith.constant 0 : index
    %c0_14 = arith.constant 0 : index
    %16 = vector.load %arg3[%c0_13, %c0_14] : memref<1x6xf32, #tpu.memory_space<vmem>>, vector<1x6xf32>
    %17 = vector.broadcast %16 : vector<1x6xf32> to vector<208x6xf32>
    %18 = arith.addf %15, %17 : vector<208x6xf32>
    %cst_15 = arith.constant 0.000000e+00 : f32
    %19 = vector.broadcast %cst_15 : f32 to vector<208x6xf32>
    %20 = arith.maximumf %18, %19 : vector<208x6xf32>
    %21 = arith.truncf %20 : vector<208x6xf32> to vector<208x6xbf16>
    %c0_16 = arith.constant 0 : index
    %c0_17 = arith.constant 0 : index
    %22 = vector.load %arg4[%c0_16, %c0_17] : memref<208x6xbf16, #tpu.memory_space<vmem>>, vector<208x6xbf16>
    tpu.vector_store %arg4[%c0_16, %c0_17], %21 {strides = array<i32>} : memref<208x6xbf16, #tpu.memory_space<vmem>>, vector<208x6xbf16>,
    return
  }
  func.func @transform_0(%arg0: i32) -> (i32, i32, i32) {
    %c0_i32 = arith.constant 0 : i32
    %c0_i32_0 = arith.constant 0 : i32
    %c0_i32_1 = arith.constant 0 : i32
    return %c0_i32, %arg0, %c0_i32_0 : i32, i32, i32
  }
  func.func @transform_1(%arg0: i32) -> (i32, i32) {
    %c0_i32 = arith.constant 0 : i32
    %c0_i32_0 = arith.constant 0 : i32
    %c0_i32_1 = arith.constant 0 : i32
    return %c0_i32, %c0_i32_0 : i32, i32
  }
  func.func @transform_2(%arg0: i32) -> (i32, i32) {
    %c0_i32 = arith.constant 0 : i32
    %c0_i32_0 = arith.constant 0 : i32
    %c0_i32_1 = arith.constant 0 : i32
    return %c0_i32, %c0_i32_0 : i32, i32
  }
  func.func @transform_3(%arg0: i32) -> (i32, i32) {
    %c0_i32 = arith.constant 0 : i32
    %c0_i32_0 = arith.constant 0 : i32
    return %arg0, %c0_i32 : i32, i32
  }
}

module attributes {stable_mosaic.version = 11 : i64} {
  func.func @_conv_relu_pool_kernel(%arg0: i32, %arg1: memref<4x32x150xbf16, #tpu.memory_space<vmem>>, %arg2: memref<150x16xbf16, #tpu.memory_space<vmem>>, %arg3: memref<1x16xf32, #tpu.memory_space<vmem>>, %arg4: memref<32x16xbf16, #tpu.memory_space<vmem>>) attributes {dimension_semantics = [#tpu.dimension_semantics<parallel>], iteration_bounds = array<i64: 2>, scalar_prefetch = 0 : i64, scratch_operands = 0 : i64, tpu.core_type = #tpu.core_type<tc>, window_params = [{transform_indices = @transform_0, window_bounds = array<i64: 4, 32, 150>}, {pipeline_mode = #tpu.pipeline_mode<synchronous>, transform_indices = @transform_1, window_bounds = array<i64: 150, 16>}, {pipeline_mode = #tpu.pipeline_mode<synchronous>, transform_indices = @transform_2, window_bounds = array<i64: 1, 16>}, {transform_indices = @transform_3, window_bounds = array<i64: 32, 16>}]} {
    %c0 = arith.constant 0 : index
    %c0_0 = arith.constant 0 : index
    %0 = vector.load %arg2[%c0, %c0_0] : memref<150x16xbf16, #tpu.memory_space<vmem>>, vector<150x16xbf16>
    %c0_1 = arith.constant 0 : index
    %c0_2 = arith.constant 0 : index
    %c0_3 = arith.constant 0 : index
    %1 = vector.load %arg1[%c0_1, %c0_2, %c0_3] : memref<4x32x150xbf16, #tpu.memory_space<vmem>>, vector<1x32x150xbf16>
    %2 = vector.shape_cast %1 : vector<1x32x150xbf16> to vector<32x150xbf16>
    %cst = arith.constant dense<0.000000e+00> : vector<32x16xf32>
    %3 = tpu.matmul %2, %0, %cst {dimension_numbers = #tpu.dot_dimension_numbers<[1], [0], [0], [1], [0, 0, 1, 1], [], []>} : vector<32x150xbf16>, vector<150x16xbf16>, vector<32x16xf32> -> vector<32x16xf32>
    %c1 = arith.constant 1 : index
    %c0_4 = arith.constant 0 : index
    %c0_5 = arith.constant 0 : index
    %4 = vector.load %arg1[%c1, %c0_4, %c0_5] : memref<4x32x150xbf16, #tpu.memory_space<vmem>>, vector<1x32x150xbf16>
    %5 = vector.shape_cast %4 : vector<1x32x150xbf16> to vector<32x150xbf16>
    %cst_6 = arith.constant dense<0.000000e+00> : vector<32x16xf32>
    %6 = tpu.matmul %5, %0, %cst_6 {dimension_numbers = #tpu.dot_dimension_numbers<[1], [0], [0], [1], [0, 0, 1, 1], [], []>} : vector<32x150xbf16>, vector<150x16xbf16>, vector<32x16xf32> -> vector<32x16xf32>
    %7 = arith.maximumf %3, %6 : vector<32x16xf32>
    %c2 = arith.constant 2 : index
    %c0_7 = arith.constant 0 : index
    %c0_8 = arith.constant 0 : index
    %8 = vector.load %arg1[%c2, %c0_7, %c0_8] : memref<4x32x150xbf16, #tpu.memory_space<vmem>>, vector<1x32x150xbf16>
    %9 = vector.shape_cast %8 : vector<1x32x150xbf16> to vector<32x150xbf16>
    %cst_9 = arith.constant dense<0.000000e+00> : vector<32x16xf32>
    %10 = tpu.matmul %9, %0, %cst_9 {dimension_numbers = #tpu.dot_dimension_numbers<[1], [0], [0], [1], [0, 0, 1, 1], [], []>} : vector<32x150xbf16>, vector<150x16xbf16>, vector<32x16xf32> -> vector<32x16xf32>
    %11 = arith.maximumf %7, %10 : vector<32x16xf32>
    %c3 = arith.constant 3 : index
    %c0_10 = arith.constant 0 : index
    %c0_11 = arith.constant 0 : index
    %12 = vector.load %arg1[%c3, %c0_10, %c0_11] : memref<4x32x150xbf16, #tpu.memory_space<vmem>>, vector<1x32x150xbf16>
    %13 = vector.shape_cast %12 : vector<1x32x150xbf16> to vector<32x150xbf16>
    %cst_12 = arith.constant dense<0.000000e+00> : vector<32x16xf32>
    %14 = tpu.matmul %13, %0, %cst_12 {dimension_numbers = #tpu.dot_dimension_numbers<[1], [0], [0], [1], [0, 0, 1, 1], [], []>} : vector<32x150xbf16>, vector<150x16xbf16>, vector<32x16xf32> -> vector<32x16xf32>
    %15 = arith.maximumf %11, %14 : vector<32x16xf32>
    %c0_13 = arith.constant 0 : index
    %c0_14 = arith.constant 0 : index
    %16 = vector.load %arg3[%c0_13, %c0_14] : memref<1x16xf32, #tpu.memory_space<vmem>>, vector<1x16xf32>
    %17 = vector.broadcast %16 : vector<1x16xf32> to vector<32x16xf32>
    %18 = arith.addf %15, %17 : vector<32x16xf32>
    %cst_15 = arith.constant 0.000000e+00 : f32
    %19 = vector.broadcast %cst_15 : f32 to vector<32x16xf32>
    %20 = arith.maximumf %18, %19 : vector<32x16xf32>
    %21 = arith.truncf %20 : vector<32x16xf32> to vector<32x16xbf16>
    %c0_16 = arith.constant 0 : index
    %c0_17 = arith.constant 0 : index
    %22 = vector.load %arg4[%c0_16, %c0_17] : memref<32x16xbf16, #tpu.memory_space<vmem>>, vector<32x16xbf16>
    tpu.vector_store %arg4[%c0_16, %c0_17], %21 {strides = array<i32>} : memref<32x16xbf16, #tpu.memory_space<vmem>>, vector<32x16xbf16>,
    return
  }
  func.func @transform_0(%arg0: i32) -> (i32, i32, i32) {
    %c0_i32 = arith.constant 0 : i32
    %c0_i32_0 = arith.constant 0 : i32
    %c0_i32_1 = arith.constant 0 : i32
    return %c0_i32, %arg0, %c0_i32_0 : i32, i32, i32
  }
  func.func @transform_1(%arg0: i32) -> (i32, i32) {
    %c0_i32 = arith.constant 0 : i32
    %c0_i32_0 = arith.constant 0 : i32
    %c0_i32_1 = arith.constant 0 : i32
    return %c0_i32, %c0_i32_0 : i32, i32
  }
  func.func @transform_2(%arg0: i32) -> (i32, i32) {
    %c0_i32 = arith.constant 0 : i32
    %c0_i32_0 = arith.constant 0 : i32
    %c0_i32_1 = arith.constant 0 : i32
    return %c0_i32, %c0_i32_0 : i32, i32
  }
  func.func @transform_3(%arg0: i32) -> (i32, i32) {
    %c0_i32 = arith.constant 0 : i32
    %c0_i32_0 = arith.constant 0 : i32
    return %arg0, %c0_i32 : i32, i32
  }
}

module attributes {stable_mosaic.version = 11 : i64} {
  func.func @_head_kernel(%arg0: i32, %arg1: memref<2x400xbf16, #tpu.memory_space<vmem>>, %arg2: memref<400x120xbf16, #tpu.memory_space<vmem>>, %arg3: memref<1x120xf32, #tpu.memory_space<vmem>>, %arg4: memref<120x84xbf16, #tpu.memory_space<vmem>>, %arg5: memref<1x84xf32, #tpu.memory_space<vmem>>, %arg6: memref<84x10xbf16, #tpu.memory_space<vmem>>, %arg7: memref<1x10xf32, #tpu.memory_space<vmem>>, %arg8: memref<2x10xf32, #tpu.memory_space<vmem>>) attributes {dimension_semantics = [#tpu.dimension_semantics<parallel>], iteration_bounds = array<i64: 1>, scalar_prefetch = 0 : i64, scratch_operands = 0 : i64, tpu.core_type = #tpu.core_type<tc>, window_params = [{transform_indices = @transform_0, window_bounds = array<i64: 2, 400>}, {pipeline_mode = #tpu.pipeline_mode<synchronous>, transform_indices = @transform_1, window_bounds = array<i64: 400, 120>}, {pipeline_mode = #tpu.pipeline_mode<synchronous>, transform_indices = @transform_2, window_bounds = array<i64: 1, 120>}, {pipeline_mode = #tpu.pipeline_mode<synchronous>, transform_indices = @transform_3, window_bounds = array<i64: 120, 84>}, {pipeline_mode = #tpu.pipeline_mode<synchronous>, transform_indices = @transform_4, window_bounds = array<i64: 1, 84>}, {pipeline_mode = #tpu.pipeline_mode<synchronous>, transform_indices = @transform_5, window_bounds = array<i64: 84, 10>}, {pipeline_mode = #tpu.pipeline_mode<synchronous>, transform_indices = @transform_6, window_bounds = array<i64: 1, 10>}, {transform_indices = @transform_7, window_bounds = array<i64: 2, 10>}]} {
    %c0 = arith.constant 0 : index
    %c0_0 = arith.constant 0 : index
    %0 = vector.load %arg1[%c0, %c0_0] : memref<2x400xbf16, #tpu.memory_space<vmem>>, vector<2x400xbf16>
    %c0_1 = arith.constant 0 : index
    %c0_2 = arith.constant 0 : index
    %1 = vector.load %arg2[%c0_1, %c0_2] : memref<400x120xbf16, #tpu.memory_space<vmem>>, vector<400x120xbf16>
    %cst = arith.constant dense<0.000000e+00> : vector<2x120xf32>
    %2 = tpu.matmul %0, %1, %cst {dimension_numbers = #tpu.dot_dimension_numbers<[1], [0], [0], [1], [0, 0, 1, 1], [], []>} : vector<2x400xbf16>, vector<400x120xbf16>, vector<2x120xf32> -> vector<2x120xf32>
    %c0_3 = arith.constant 0 : index
    %c0_4 = arith.constant 0 : index
    %3 = vector.load %arg3[%c0_3, %c0_4] : memref<1x120xf32, #tpu.memory_space<vmem>>, vector<1x120xf32>
    %4 = vector.broadcast %3 : vector<1x120xf32> to vector<2x120xf32>
    %5 = arith.addf %2, %4 : vector<2x120xf32>
    %cst_5 = arith.constant 0.000000e+00 : f32
    %6 = vector.broadcast %cst_5 : f32 to vector<2x120xf32>
    %7 = arith.maximumf %5, %6 : vector<2x120xf32>
    %8 = arith.truncf %7 : vector<2x120xf32> to vector<2x120xbf16>
    %c0_6 = arith.constant 0 : index
    %c0_7 = arith.constant 0 : index
    %9 = vector.load %arg4[%c0_6, %c0_7] : memref<120x84xbf16, #tpu.memory_space<vmem>>, vector<120x84xbf16>
    %cst_8 = arith.constant dense<0.000000e+00> : vector<2x84xf32>
    %10 = tpu.matmul %8, %9, %cst_8 {dimension_numbers = #tpu.dot_dimension_numbers<[1], [0], [0], [1], [0, 0, 1, 1], [], []>} : vector<2x120xbf16>, vector<120x84xbf16>, vector<2x84xf32> -> vector<2x84xf32>
    %c0_9 = arith.constant 0 : index
    %c0_10 = arith.constant 0 : index
    %11 = vector.load %arg5[%c0_9, %c0_10] : memref<1x84xf32, #tpu.memory_space<vmem>>, vector<1x84xf32>
    %12 = vector.broadcast %11 : vector<1x84xf32> to vector<2x84xf32>
    %13 = arith.addf %10, %12 : vector<2x84xf32>
    %cst_11 = arith.constant 0.000000e+00 : f32
    %14 = vector.broadcast %cst_11 : f32 to vector<2x84xf32>
    %15 = arith.maximumf %13, %14 : vector<2x84xf32>
    %16 = arith.truncf %15 : vector<2x84xf32> to vector<2x84xbf16>
    %c0_12 = arith.constant 0 : index
    %c0_13 = arith.constant 0 : index
    %17 = vector.load %arg6[%c0_12, %c0_13] : memref<84x10xbf16, #tpu.memory_space<vmem>>, vector<84x10xbf16>
    %cst_14 = arith.constant dense<0.000000e+00> : vector<2x10xf32>
    %18 = tpu.matmul %16, %17, %cst_14 {dimension_numbers = #tpu.dot_dimension_numbers<[1], [0], [0], [1], [0, 0, 1, 1], [], []>} : vector<2x84xbf16>, vector<84x10xbf16>, vector<2x10xf32> -> vector<2x10xf32>
    %c0_15 = arith.constant 0 : index
    %c0_16 = arith.constant 0 : index
    %19 = vector.load %arg7[%c0_15, %c0_16] : memref<1x10xf32, #tpu.memory_space<vmem>>, vector<1x10xf32>
    %20 = vector.broadcast %19 : vector<1x10xf32> to vector<2x10xf32>
    %21 = arith.addf %18, %20 : vector<2x10xf32>
    %c0_17 = arith.constant 0 : index
    %c0_18 = arith.constant 0 : index
    %22 = vector.load %arg8[%c0_17, %c0_18] : memref<2x10xf32, #tpu.memory_space<vmem>>, vector<2x10xf32>
    tpu.vector_store %arg8[%c0_17, %c0_18], %21 {strides = array<i32>} : memref<2x10xf32, #tpu.memory_space<vmem>>, vector<2x10xf32>,
    return
  }
  func.func @transform_0(%arg0: i32) -> (i32, i32) {
    %c0_i32 = arith.constant 0 : i32
    %c0_i32_0 = arith.constant 0 : i32
    return %arg0, %c0_i32 : i32, i32
  }
  func.func @transform_1(%arg0: i32) -> (i32, i32) {
    %c0_i32 = arith.constant 0 : i32
    %c0_i32_0 = arith.constant 0 : i32
    %c0_i32_1 = arith.constant 0 : i32
    return %c0_i32, %c0_i32_0 : i32, i32
  }
  func.func @transform_2(%arg0: i32) -> (i32, i32) {
    %c0_i32 = arith.constant 0 : i32
    %c0_i32_0 = arith.constant 0 : i32
    %c0_i32_1 = arith.constant 0 : i32
    return %c0_i32, %c0_i32_0 : i32, i32
  }
  func.func @transform_3(%arg0: i32) -> (i32, i32) {
    %c0_i32 = arith.constant 0 : i32
    %c0_i32_0 = arith.constant 0 : i32
    %c0_i32_1 = arith.constant 0 : i32
    return %c0_i32, %c0_i32_0 : i32, i32
  }
  func.func @transform_4(%arg0: i32) -> (i32, i32) {
    %c0_i32 = arith.constant 0 : i32
    %c0_i32_0 = arith.constant 0 : i32
    %c0_i32_1 = arith.constant 0 : i32
    return %c0_i32, %c0_i32_0 : i32, i32
  }
  func.func @transform_5(%arg0: i32) -> (i32, i32) {
    %c0_i32 = arith.constant 0 : i32
    %c0_i32_0 = arith.constant 0 : i32
    %c0_i32_1 = arith.constant 0 : i32
    return %c0_i32, %c0_i32_0 : i32, i32
  }
  func.func @transform_6(%arg0: i32) -> (i32, i32) {
    %c0_i32 = arith.constant 0 : i32
    %c0_i32_0 = arith.constant 0 : i32
    %c0_i32_1 = arith.constant 0 : i32
    return %c0_i32, %c0_i32_0 : i32, i32
  }
  func.func @transform_7(%arg0: i32) -> (i32, i32) {
    %c0_i32 = arith.constant 0 : i32
    %c0_i32_0 = arith.constant 0 : i32
    return %arg0, %c0_i32 : i32, i32
  }
}

</mosaic_0001>

<bundles_post_ra>
// kernel: dropnet_forward.3
= control target key start
LH: loop header
LB: loop body
LE: loop exit
PB: predicated region body
PF: predicated region fallthrough
CT: control target
= control target key end

     0   :  { %s3283_s12 = smov 0   ;;  %s3285_s13 = smov 0   ;;  %s4195_s0 = inlined_call_operand.vmem [shape: bf16[4,392,25], index: 0, kind: input, shape index: {}]   ;;  %s4196_s1 = inlined_call_operand.vmem [shape: bf16[25,6], index: 1, kind: input, shape index: {}]   ;;  %s4197_s2 = inlined_call_operand.vmem [shape: f32[1,6], index: 2, kind: input, shape index: {}]   ;;  %s4198_s3 = inlined_call_operand.vmem [shape: bf16[392,6], index: 3, kind: output, shape index: {}]  }
   0x1   :  { %s3287_s14 = smov 0  }
   0x2 LB: > { %s3299_s15 = sadd.s32 4294967295, %s3194_s14   ;;  %s3302_s16 = sadd.s32 1, %s3194_s14   ;;  %s3194_s14 = sphi %s3287_s14, %s4247_s14   ;;  %s3190_s13 = sphi %s3285_s13, %s4246_s13   ;;  %s3186_s12 = sphi %s3283_s12, %s4245_s12  }
   0x3   : > { %s17_s17 = ssub.s32 %s3194_s14, %s3302_s16  ;;  %s20_s18 = sadd.s32 1, %s3190_s13 }
   0x4   : > { %p18_p0 = scmp.eq.s32.totalorder %s17_s17, 0  ;;  %p27_p1 = scmp.ne.s32.totalorder %s3190_s13, %s3186_s12 }
   0x5   : > { %p28_p2 = scmp.eq.s32.totalorder %s3194_s14, 0  ;;  %p99_p3 = scmp.eq.s32.totalorder %s3299_s15, 1 }
   0x6   : > { %s3312_s19 = scalar_select %p18_p0, %s3190_s13, %s20_s18  }
   0x7   : > { %p29_p4 = por %p28_p2, %p27_p1  ;;  %p3314_p5 = por %p99_p3, %p27_p1 }
   0x8   : > { %p2339_p6 = scmp.ge.s32.totalorder %s3194_s14, 2 }
   0xa   : > { %127 = sbr.rel (%p2339_p6) target bundleno = 106 (0x6a), region = 24 }
   0xf   : > { %130 = sbr.rel (!%p29_p4) target bundleno = 106 (0x6a), region = 28  ;;  %s132_s21 = sand.u32 (%p29_p4), 1, %s3190_s13  }
  0x10   : > { %s135_s22 = smul.u32 (%p29_p4), 26, %s3194_s14 }
  0x11   : > { %s2891_s23 = smul.u32 (%p29_p4), 416, %s132_s21 }
  0x12   : > { %s136_s24 = ssub.s32 (%p29_p4), 49, %s135_s22  ;;  %s2577_s25 = smul.u32 (%p29_p4), 104, %s3194_s14 }
  0x13   : > { %p137_p7 = scmp.lt.s32.totalorder (%p29_p4), %s136_s24, 26  ;;  %s3330_s30 = scalar_lea.vmem (%p29_p4), [#allocation2], %s2891_s23  }
  0x14   : > { %s3325_s28 = scalar_lea.vmem %s4195_s0, %s2577_s25  }
  0x15   : > { %s4249_s24 = smov (!%p137_p7, %s136_s24), 26 }
  0x16   : > { %s2340_s29 = sshll.u32 %s4249_s24, 8 }
  0x17   : > { %p2343_p8 = scmp.eq.s32.totalorder %s2340_s29, 0 }
  0x18   : > { %s3333_s4 = sshrl.u32 (!%p2343_p8), %s4249_s24, 4 }
  0x19   : > { %145 = sbr.rel (%p2343_p8) target bundleno = 106 (0x6a), region = 32  ;;  %p2344_p9 = scmp.le.s32.totalorder (!%p2343_p8), %s3333_s4, 0 }
  0x1e   : > { %2265 = sbr.rel (%p2344_p9) target bundleno = 85 (0x55), region = 196  ;;  %s4204_s5 = smov (!%p2344_p9), %s3330_s30 }
  0x1f   : > { %s4205_s6 = smov (!%p2344_p9), %s3325_s28  ;;  %s3342_s7 = smov (!%p2344_p9), 0  }
  0x20   : > { %s3344_s8 = smov (!%p2344_p9), 0  }
  0x23 LB: >> { %v162_v0 = vld [vmem:[%s3202_s6] sm:$0xf]  ;;  %v164_v1 = vld [vmem:[%s3202_s6 + $0x4] sm:$0xf]  ;;  %v166_v2 = vld [vmem:[%s3202_s6 + $0x8] sm:$0xf]  ;;  %s3210_s8 = sphi %s3344_s8, %s156_s8   ;;  %s3206_s7 = sphi %s3342_s7, %s4206_s7   ;;  %s3202_s6 = sphi %s4205_s6, %s295_s6   ;;  %s3198_s5 = sphi %s4204_s5, %s296_s5  }
  0x24   : >> { %163 = vst [vmem:[%s3198_s5] sm:$0xf] %v162_v0  ;;  %165 = vst [vmem:[%s3198_s5 + $0x4] sm:$0xf] %v164_v1  ;;  %v168_v3 = vld [vmem:[%s3202_s6 + $0xc] sm:$0xf]  ;;  %s290_s9 = sadd.s32 1, %s3206_s7 }
  0x25   : >> { %167 = vst [vmem:[%s3198_s5 + $0x8] sm:$0xf] %v166_v2  ;;  %v170_v4 = vld [vmem:[%s3202_s6 + $0x10] sm:$0xf]  ;;  %v172_v5 = vld [vmem:[%s3202_s6 + $0x14] sm:$0xf]  ;;  %p291_p10 = scmp.ge.s32.totalorder %s290_s9, %s3333_s4 }
  0x26   : >> { %169 = vst [vmem:[%s3198_s5 + $0xc] sm:$0xf] %v168_v3  ;;  %171 = vst [vmem:[%s3198_s5 + $0x10] sm:$0xf] %v170_v4  ;;  %v174_v6 = vld [vmem:[%s3202_s6 + $0x18] sm:$0xf] }
  0x27   : >> { %173 = vst [vmem:[%s3198_s5 + $0x14] sm:$0xf] %v172_v5  ;;  %v176_v7 = vld [vmem:[%s3202_s6 + $0x1c] sm:$0xf]  ;;  %v178_v8 = vld [vmem:[%s3202_s6 + $0x20] sm:$0xf] }
  0x28   : >> { %175 = vst [vmem:[%s3198_s5 + $0x18] sm:$0xf] %v174_v6  ;;  %177 = vst [vmem:[%s3198_s5 + $0x1c] sm:$0xf] %v176_v7  ;;  %v180_v9 = vld [vmem:[%s3202_s6 + $0x24] sm:$0xf] }
  0x29   : >> { %179 = vst [vmem:[%s3198_s5 + $0x20] sm:$0xf] %v178_v8  ;;  %v182_v10 = vld [vmem:[%s3202_s6 + $0x28] sm:$0xf]  ;;  %v184_v11 = vld [vmem:[%s3202_s6 + $0x2c] sm:$0xf] }
  0x2a   : >> { %181 = vst [vmem:[%s3198_s5 + $0x24] sm:$0xf] %v180_v9  ;;  %183 = vst [vmem:[%s3198_s5 + $0x28] sm:$0xf] %v182_v10  ;;  %v186_v12 = vld [vmem:[%s3202_s6 + $0x30] sm:$0xf] }
  0x2b   : >> { %185 = vst [vmem:[%s3198_s5 + $0x2c] sm:$0xf] %v184_v11  ;;  %v188_v13 = vld [vmem:[%s3202_s6 + $0x34] sm:$0xf]  ;;  %v190_v14 = vld [vmem:[%s3202_s6 + $0x38] sm:$0xf] }
  0x2c   : >> { %187 = vst [vmem:[%s3198_s5 + $0x30] sm:$0xf] %v186_v12  ;;  %189 = vst [vmem:[%s3198_s5 + $0x34] sm:$0xf] %v188_v13  ;;  %v192_v15 = vld [vmem:[%s3202_s6 + $0x3c] sm:$0xf] }
  0x2d   : >> { %191 = vst [vmem:[%s3198_s5 + $0x38] sm:$0xf] %v190_v14  ;;  %v194_v16 = vld [vmem:[%s3202_s6 + $0xc4] sm:$0xf]  ;;  %v196_v17 = vld [vmem:[%s3202_s6 + $0xc8] sm:$0xf] }
  0x2e   : >> { %193 = vst [vmem:[%s3198_s5 + $0x3c] sm:$0xf] %v192_v15  ;;  %195 = vst [vmem:[%s3198_s5 + $0x68] sm:$0xf] %v194_v16  ;;  %v198_v18 = vld [vmem:[%s3202_s6 + $0xcc] sm:$0xf] }
  0x2f   : >> { %197 = vst [vmem:[%s3198_s5 + $0x6c] sm:$0xf] %v196_v17  ;;  %v200_v19 = vld [vmem:[%s3202_s6 + $0xd0] sm:$0xf]  ;;  %v202_v20 = vld [vmem:[%s3202_s6 + $0xd4] sm:$0xf] }
  0x30   : >> { %199 = vst [vmem:[%s3198_s5 + $0x70] sm:$0xf] %v198_v18  ;;  %201 = vst [vmem:[%s3198_s5 + $0x74] sm:$0xf] %v200_v19  ;;  %v204_v21 = vld [vmem:[%s3202_s6 + $0xd8] sm:$0xf] }
  0x31   : >> { %203 = vst [vmem:[%s3198_s5 + $0x78] sm:$0xf] %v202_v20  ;;  %v206_v22 = vld [vmem:[%s3202_s6 + $0xdc] sm:$0xf]  ;;  %v208_v23 = vld [vmem:[%s3202_s6 + $0xe0] sm:$0xf] }
  0x32   : >> { %205 = vst [vmem:[%s3198_s5 + $0x7c] sm:$0xf] %v204_v21  ;;  %207 = vst [vmem:[%s3198_s5 + $0x80] sm:$0xf] %v206_v22  ;;  %v210_v24 = vld [vmem:[%s3202_s6 + $0xe4] sm:$0xf] }
  0x33   : >> { %209 = vst [vmem:[%s3198_s5 + $0x84] sm:$0xf] %v208_v23  ;;  %v212_v25 = vld [vmem:[%s3202_s6 + $0xe8] sm:$0xf]  ;;  %v214_v26 = vld [vmem:[%s3202_s6 + $0xec] sm:$0xf] }
  0x34   : >> { %211 = vst [vmem:[%s3198_s5 + $0x88] sm:$0xf] %v210_v24  ;;  %213 = vst [vmem:[%s3198_s5 + $0x8c] sm:$0xf] %v212_v25  ;;  %v216_v27 = vld [vmem:[%s3202_s6 + $0xf0] sm:$0xf] }
  0x35   : >> { %215 = vst [vmem:[%s3198_s5 + $0x90] sm:$0xf] %v214_v26  ;;  %v218_v28 = vld [vmem:[%s3202_s6 + $0xf4] sm:$0xf]  ;;  %v220_v29 = vld [vmem:[%s3202_s6 + $0xf8] sm:$0xf] }
  0x36   : >> { %217 = vst [vmem:[%s3198_s5 + $0x94] sm:$0xf] %v216_v27  ;;  %219 = vst [vmem:[%s3198_s5 + $0x98] sm:$0xf] %v218_v28  ;;  %v222_v30 = vld [vmem:[%s3202_s6 + $0xfc] sm:$0xf] }
  0x37   : >> { %221 = vst [vmem:[%s3198_s5 + $0x9c] sm:$0xf] %v220_v29  ;;  %v224_v31 = vld [vmem:[%s3202_s6 + $0x100] sm:$0xf]  ;;  %v226_v32 = vld [vmem:[%s3202_s6 + $0x188] sm:$0xf] }
  0x38   : >> { %223 = vst [vmem:[%s3198_s5 + $0xa0] sm:$0xf] %v222_v30  ;;  %225 = vst [vmem:[%s3198_s5 + $0xa4] sm:$0xf] %v224_v31  ;;  %v228_v33 = vld [vmem:[%s3202_s6 + $0x18c] sm:$0xf] }
  0x39   : >> { %227 = vst [vmem:[%s3198_s5 + $0xd0] sm:$0xf] %v226_v32  ;;  %v230_v34 = vld [vmem:[%s3202_s6 + $0x190] sm:$0xf]  ;;  %v232_v35 = vld [vmem:[%s3202_s6 + $0x194] sm:$0xf] }
  0x3a   : >> { %229 = vst [vmem:[%s3198_s5 + $0xd4] sm:$0xf] %v228_v33  ;;  %231 = vst [vmem:[%s3198_s5 + $0xd8] sm:$0xf] %v230_v34  ;;  %v234_v36 = vld [vmem:[%s3202_s6 + $0x198] sm:$0xf] }
  0x3b   : >> { %233 = vst [vmem:[%s3198_s5 + $0xdc] sm:$0xf] %v232_v35  ;;  %v236_v37 = vld [vmem:[%s3202_s6 + $0x19c] sm:$0xf]  ;;  %v238_v38 = vld [vmem:[%s3202_s6 + $0x1a0] sm:$0xf] }
  0x3c   : >> { %235 = vst [vmem:[%s3198_s5 + $0xe0] sm:$0xf] %v234_v36  ;;  %237 = vst [vmem:[%s3198_s5 + $0xe4] sm:$0xf] %v236_v37  ;;  %v240_v39 = vld [vmem:[%s3202_s6 + $0x1a4] sm:$0xf] }
  0x3d   : >> { %239 = vst [vmem:[%s3198_s5 + $0xe8] sm:$0xf] %v238_v38  ;;  %v242_v40 = vld [vmem:[%s3202_s6 + $0x1a8] sm:$0xf]  ;;  %v244_v41 = vld [vmem:[%s3202_s6 + $0x1ac] sm:$0xf] }
  0x3e   : >> { %241 = vst [vmem:[%s3198_s5 + $0xec] sm:$0xf] %v240_v39  ;;  %243 = vst [vmem:[%s3198_s5 + $0xf0] sm:$0xf] %v242_v40  ;;  %v246_v42 = vld [vmem:[%s3202_s6 + $0x1b0] sm:$0xf] }
  0x3f   : >> { %245 = vst [vmem:[%s3198_s5 + $0xf4] sm:$0xf] %v244_v41  ;;  %v248_v43 = vld [vmem:[%s3202_s6 + $0x1b4] sm:$0xf]  ;;  %v250_v44 = vld [vmem:[%s3202_s6 + $0x1b8] sm:$0xf] }
  0x40   : >> { %247 = vst [vmem:[%s3198_s5 + $0xf8] sm:$0xf] %v246_v42  ;;  %249 = vst [vmem:[%s3198_s5 + $0xfc] sm:$0xf] %v248_v43  ;;  %v252_v45 = vld [vmem:[%s3202_s6 + $0x1bc] sm:$0xf] }
  0x41   : >> { %251 = vst [vmem:[%s3198_s5 + $0x100] sm:$0xf] %v250_v44  ;;  %v254_v46 = vld [vmem:[%s3202_s6 + $0x1c0] sm:$0xf]  ;;  %v256_v47 = vld [vmem:[%s3202_s6 + $0x1c4] sm:$0xf] }
  0x42   : >> { %253 = vst [vmem:[%s3198_s5 + $0x104] sm:$0xf] %v252_v45  ;;  %255 = vst [vmem:[%s3198_s5 + $0x108] sm:$0xf] %v254_v46  ;;  %v258_v48 = vld [vmem:[%s3202_s6 + $0x24c] sm:$0xf] }
  0x43   : >> { %257 = vst [vmem:[%s3198_s5 + $0x10c] sm:$0xf] %v256_v47  ;;  %v260_v49 = vld [vmem:[%s3202_s6 + $0x250] sm:$0xf]  ;;  %v262_v50 = vld [vmem:[%s3202_s6 + $0x254] sm:$0xf] }
  0x44   : >> { %259 = vst [vmem:[%s3198_s5 + $0x138] sm:$0xf] %v258_v48  ;;  %261 = vst [vmem:[%s3198_s5 + $0x13c] sm:$0xf] %v260_v49  ;;  %v264_v51 = vld [vmem:[%s3202_s6 + $0x258] sm:$0xf] }
  0x45   : >> { %263 = vst [vmem:[%s3198_s5 + $0x140] sm:$0xf] %v262_v50  ;;  %v266_v52 = vld [vmem:[%s3202_s6 + $0x25c] sm:$0xf]  ;;  %v268_v53 = vld [vmem:[%s3202_s6 + $0x260] sm:$0xf] }
  0x46   : >> { %265 = vst [vmem:[%s3198_s5 + $0x144] sm:$0xf] %v264_v51  ;;  %267 = vst [vmem:[%s3198_s5 + $0x148] sm:$0xf] %v266_v52  ;;  %v270_v54 = vld [vmem:[%s3202_s6 + $0x264] sm:$0xf] }
  0x47   : >> { %269 = vst [vmem:[%s3198_s5 + $0x14c] sm:$0xf] %v268_v53  ;;  %v272_v55 = vld [vmem:[%s3202_s6 + $0x268] sm:$0xf]  ;;  %v274_v56 = vld [vmem:[%s3202_s6 + $0x26c] sm:$0xf] }
  0x48   : >> { %271 = vst [vmem:[%s3198_s5 + $0x150] sm:$0xf] %v270_v54  ;;  %273 = vst [vmem:[%s3198_s5 + $0x154] sm:$0xf] %v272_v55  ;;  %v276_v57 = vld [vmem:[%s3202_s6 + $0x270] sm:$0xf] }
  0x49   : >> { %275 = vst [vmem:[%s3198_s5 + $0x158] sm:$0xf] %v274_v56  ;;  %v278_v58 = vld [vmem:[%s3202_s6 + $0x274] sm:$0xf]  ;;  %v280_v59 = vld [vmem:[%s3202_s6 + $0x278] sm:$0xf] }
  0x4a   : >> { %277 = vst [vmem:[%s3198_s5 + $0x15c] sm:$0xf] %v276_v57  ;;  %279 = vst [vmem:[%s3198_s5 + $0x160] sm:$0xf] %v278_v58  ;;  %v282_v60 = vld [vmem:[%s3202_s6 + $0x27c] sm:$0xf] }
  0x4b   : >> { %281 = vst [vmem:[%s3198_s5 + $0x164] sm:$0xf] %v280_v59  ;;  %v284_v61 = vld [vmem:[%s3202_s6 + $0x280] sm:$0xf]  ;;  %v286_v62 = vld [vmem:[%s3202_s6 + $0x284] sm:$0xf] }
  0x4c   : >> { %283 = vst [vmem:[%s3198_s5 + $0x168] sm:$0xf] %v282_v60  ;;  %285 = vst [vmem:[%s3198_s5 + $0x16c] sm:$0xf] %v284_v61  ;;  %v288_v63 = vld [vmem:[%s3202_s6 + $0x288] sm:$0xf] }
  0x4d   : >> { %287 = vst [vmem:[%s3198_s5 + $0x170] sm:$0xf] %v286_v62  ;;  %289 = vst [vmem:[%s3198_s5 + $0x174] sm:$0xf] %v288_v63  ;;  %s4251_s9 = smov (%p291_p10, %s290_s9), 0  ;;  %s156_s8 = sadd.s32 1, %s3210_s8  }
  0x4e   : >> { %s2345_s10 = sshll.u32 %s4251_s9, 6  ;;  %p155_p11 = scmp.ge.s32.totalorder %s156_s8, %s3333_s4 }
  0x4f   : >> { %s295_s6 = scalar_lea.vmem %s3325_s28, %s2345_s10   ;;  %s296_s5 = scalar_lea.vmem %s3330_s30, %s2345_s10 [#allocation2]  }
  0x50   : >> { %s4206_s7 = smov %s4251_s9  ;;  %158 = sbr.rel (!%p155_p11) target bundleno = 35 (0x23), region = 202 }
  0x55 PF: > { %s3501_s11 = sand.u32 15, %s4249_s24   ;;  %s2578_s17 = sshll.u32 %s3333_s4, 6 }
  0x56   : > { %s3505_s18 = scalar_lea.vmem %s3325_s28, %s2578_s17   ;;  %s3508_s21 = scalar_lea.vmem %s3330_s30, %s2578_s17 [#allocation2]  }
  0x57   : > { %p2350_p12 = scmp.le.s32.totalorder %s3501_s11, 0 }
  0x58   : > { %s4207_s22 = smov (!%p2350_p12), %s3508_s21  ;;  %s4208_s23 = smov (!%p2350_p12), %s3505_s18 }
  0x59   : > { %2279 = sbr.rel (%p2350_p12) target bundleno = 106 (0x6a), region = 207  ;;  %s3220_s25 = smov (!%p2350_p12), 0  }
  0x5a   : > { %s3224_s26 = smov (!%p2350_p12), 0  }
  0x5e LB: >> { %v313_v0 = vld [vmem:[%s3218_s23] sm:$0xf]  ;;  %v315_v1 = vld [vmem:[%s3218_s23 + $0xc4] sm:$0xf]  ;;  %v317_v2 = vld [vmem:[%s3218_s23 + $0x188] sm:$0xf]  ;;  %s3226_s26 = sphi %s3224_s26, %s307_s26   ;;  %s3222_s25 = sphi %s3220_s25, %s3221_s25   ;;  %s3218_s23 = sphi %s4208_s23, %s326_s23   ;;  %s3214_s22 = sphi %s4207_s22, %s327_s22  }
  0x5f   : >> { %314 = vst [vmem:[%s3214_s22] sm:$0xf] %v313_v0  ;;  %316 = vst [vmem:[%s3214_s22 + $0x68] sm:$0xf] %v315_v1  ;;  %v319_v3 = vld [vmem:[%s3218_s23 + $0x24c] sm:$0xf]  ;;  %s321_s24 = sadd.s32 1, %s3222_s25 }
  0x60   : >> { %318 = vst [vmem:[%s3214_s22 + $0xd0] sm:$0xf] %v317_v2  ;;  %320 = vst [vmem:[%s3214_s22 + $0x138] sm:$0xf] %v319_v3  ;;  %p322_p13 = scmp.ge.s32.totalorder %s321_s24, %s3501_s11  ;;  %s307_s26 = sadd.s32 1, %s3226_s26  }
  0x61   : >> { %p306_p0 = scmp.ge.s32.totalorder %s307_s26, %s3501_s11 }
  0x62   : >> { %s4253_s24 = smov (%p322_p13, %s321_s24), 0 }
  0x63   : >> { %s2351_s27 = sshll.u32 %s4253_s24, 2  ;;  %s3221_s25 = smov %s4253_s24  }
  0x64   : >> { %s326_s23 = scalar_lea.vmem %s3505_s18, %s2351_s27   ;;  %s327_s22 = scalar_lea.vmem %s3508_s21, %s2351_s27 [#allocation2]  }
  0x65   : > { %309 = sbr.rel (!%p306_p0) target bundleno = 94 (0x5e), region = 213 }
  0x6a PF: > { %p2353_p1 = scmp.ge.s32.totalorder %s3194_s14, 1  ;;  %p551_p2 = scmp.lt.s32.totalorder %s3194_s14, 3 }
  0x6c   : > { %p552_p3 = pnand %p2353_p1, %p551_p2 }
  0x6e   : > { %555 = sbr.rel (%p552_p3) target bundleno = 606 (0x25e), region = 90 }
  0x73   : > { %vm737_vm0 = vcmask 1043456   ;;  %v3260_v4 = vmov 0.0   ;;  %v3050_v5 = vld [vmem:[%s4196_s1 + $0x8] sm:$0x1f]   ;;  %vm738_vm1 = vcmask 1044480   ;;  %v3261_v6 = vmov 65535  }
  0x74   : > { %2667 = vmatprep.subr.bf16.mxu0 %v3260_v4  ;;  %2723 = vmatprep.subr.bf16.mxu1 %v3260_v4  ;;  %v739_v7 = vsel %vm737_vm0, 4294967295, %v3261_v6  ;;  %s558_s30 = sand.u32 1, %s3186_s12   ;;  %vm3262_vm2 = vmmov 0   ;;  %v3051_v10 = vld [vmem:[%s4196_s1] sm:$0xff]   ;;  %vm697_vm3 = vcmask 203776   ;;  %vm1926_vm4 = vcmask 44032  }
  0x75   : > { %v740_v8 = vsel %vm738_vm1, %v739_v7, 0  ;;  %2671 = vmatprep.mubr.msk.bf16.mxu0 %vm3262_vm2, %v3260_v4  ;;  %2727 = vmatprep.mubr.msk.bf16.mxu1 %vm3262_vm2, %v3260_v4  ;;  %s2892_s14 = smul.u32 416, %s558_s30 }
  0x76   : > { %v742_v9 = vand.u32 %v3050_v5, %v740_v8  ;;  %s2893_s9 = smul.u32 104, %s558_s30 }
  0x77   : > { %s3544_s6 = scalar_lea.vmem [#allocation2], %s2892_s14  ;;  %s1960_s10 = smul.u32 (%p3314_p5), 26, %s3299_s15 }
  0x78   : > { %2668 = vmatpush3.bf16.msra.mxu0 %v742_v9  ;;  %2724 = vmatpush3.bf16.msra.mxu1 %v742_v9  ;;  %v3052_v11 = vld [vmem:[%s3544_s6] sm:$0xff]   ;;  %v3053_v12 = vld [vmem:[%s3544_s6 + $0x68] sm:$0xff]   ;;  %v3055_v14 = vld [vmem:[%s3544_s6 + $0x70] sm:$0xff]   ;;  %s3930_s12 = scalar_lea.vmem [#allocation3], %s2893_s9   ;;  %s2606_s11 = smul.u32 (%p3314_p5), 104, %s3299_s15 }
  0x79   : > { %2669 = vmatprep.subr.bf16.mxu0 %v3260_v4  ;;  %2725 = vmatprep.subr.bf16.mxu1 %v3260_v4  ;;  %v3054_v13 = vld [vmem:[%s3544_s6 + $0x8] sm:$0xff]   ;;  %v3056_v15 = vld [vmem:[%s3544_s6 + $0x10] sm:$0xff]   ;;  %v3057_v16 = vld [vmem:[%s3544_s6 + $0x78] sm:$0xff]   ;;  %s1961_s17 = ssub.s32 (%p3314_p5), 49, %s1960_s10 }
  0x7a   : > { %v3058_v17 = vld [vmem:[%s3544_s6 + $0x18] sm:$0xff]   ;;  %v3059_v18 = vld [vmem:[%s3544_s6 + $0x80] sm:$0xff]   ;;  %v3061_v20 = vld [vmem:[%s3544_s6 + $0x88] sm:$0xff]   ;;  %p1962_p4 = scmp.lt.s32.totalorder (%p3314_p5), %s1961_s17, 26  ;;  %s4084_s22 = scalar_lea.vmem (%p3314_p5), %s4198_s3, %s2606_s11  }
  0x7b   : > { %v3060_v19 = vld [vmem:[%s3544_s6 + $0x20] sm:$0xff]   ;;  %v3062_v21 = vld [vmem:[%s3544_s6 + $0x28] sm:$0xff]   ;;  %v3063_v22 = vld [vmem:[%s3544_s6 + $0x90] sm:$0xff]  }
  0x7c   : > { %2670 = vmatpush3.bf16.msra.mxu0 %v3051_v10  ;;  %2726 = vmatpush3.bf16.msra.mxu1 %v3051_v10  ;;  %v3064_v23 = vld [vmem:[%s3544_s6 + $0x30] sm:$0xff]   ;;  %v3065_v24 = vld [vmem:[%s3544_s6 + $0x98] sm:$0xff]   ;;  %v3067_v26 = vld [vmem:[%s3544_s6 + $0xa0] sm:$0xff]  }
  0x7d   : > { %2779 = vmatprep.subr.bf16.mxu0 %v3260_v4  ;;  %2835 = vmatprep.subr.bf16.mxu1 %v3260_v4  ;;  %v3066_v25 = vld [vmem:[%s3544_s6 + $0x38] sm:$0xff]   ;;  %v3068_v27 = vld [vmem:[%s3544_s6 + $0x40] sm:$0xff]   ;;  %v3069_v28 = vld [vmem:[%s3544_s6 + $0xa8] sm:$0xff]  }
  0x7e   : > { %v3070_v29 = vld [vmem:[%s3544_s6 + $0x48] sm:$0xff]   ;;  %v3071_v30 = vld [vmem:[%s3544_s6 + $0xb0] sm:$0xff]   ;;  %v3073_v32 = vld [vmem:[%s3544_s6 + $0xb8] sm:$0xff]  }
  0x7f   : > { %2672 = vmatmul.mubr.msk.bf16.vlgmr.msra.gmra.mxu0 %vm697_vm3, %v3052_v11  ;;  %2728 = vmatmul.mubr.msk.bf16.vlgmr.msra.gmra.mxu1 %vm697_vm3, %v3053_v12  ;;  %v3072_v31 = vld [vmem:[%s3544_s6 + $0x50] sm:$0xff]   ;;  %v3074_v33 = vld [vmem:[%s3544_s6 + $0x58] sm:$0xff]   ;;  %v3075_v34 = vld [vmem:[%s3544_s6 + $0xc0] sm:$0xff]  }
  0x80   : > { %2780 = vmatpush3.bf16.msra.mxu0 %v742_v9  ;;  %2836 = vmatpush3.bf16.msra.mxu1 %v742_v9  ;;  %v3076_v35 = vld [vmem:[%s3544_s6 + $0x60] sm:$0xff]   ;;  %v3077_v36 = vld [vmem:[%s3544_s6 + $0xc8] sm:$0xff]   ;;  %v3078_v37 = vld [vmem:[%s3544_s6 + $0xd0] sm:$0xff]  }
  0x81   : > { %2675 = vmatprep.mubr.msk.bf16.mxu0 %vm3262_vm2, %v3260_v4  ;;  %2731 = vmatprep.mubr.msk.bf16.mxu1 %vm3262_vm2, %v3260_v4  ;;  %v3079_v38 = vld [vmem:[%s3544_s6 + $0x138] sm:$0xff]   ;;  %v3081_v40 = vld [vmem:[%s3544_s6 + $0x140] sm:$0xff]   ;;  %v3083_v42 = vld [vmem:[%s3544_s6 + $0x148] sm:$0xff]  }
  0x82   : > { %2781 = vmatprep.subr.bf16.mxu0 %v3260_v4  ;;  %2837 = vmatprep.subr.bf16.mxu1 %v3260_v4  ;;  %v3080_v39 = vld [vmem:[%s3544_s6 + $0xd8] sm:$0xff]   ;;  %v3082_v41 = vld [vmem:[%s3544_s6 + $0xe0] sm:$0xff]   ;;  %v3084_v43 = vld [vmem:[%s3544_s6 + $0xe8] sm:$0xff]  }
  0x83   : > { %v3085_v44 = vld [vmem:[%s3544_s6 + $0x150] sm:$0xff]   ;;  %v3087_v46 = vld [vmem:[%s3544_s6 + $0x158] sm:$0xff]   ;;  %v3089_v48 = vld [vmem:[%s3544_s6 + $0x160] sm:$0xff]  }
  0x84   : > { %2782 = vmatpush3.bf16.msra.mxu0 %v3051_v10  ;;  %2838 = vmatpush3.bf16.msra.mxu1 %v3051_v10  ;;  %v3086_v45 = vld [vmem:[%s3544_s6 + $0xf0] sm:$0xff]   ;;  %v3088_v47 = vld [vmem:[%s3544_s6 + $0xf8] sm:$0xff]   ;;  %v3090_v49 = vld [vmem:[%s3544_s6 + $0x100] sm:$0xff]  }
  0x85   : > { %v3091_v50 = vld [vmem:[%s3544_s6 + $0x168] sm:$0xff]   ;;  %v3093_v52 = vld [vmem:[%s3544_s6 + $0x170] sm:$0xff]   ;;  %v3095_v54 = vld [vmem:[%s3544_s6 + $0x178] sm:$0xff]  }
  0x86   : > { %v3092_v51 = vld [vmem:[%s3544_s6 + $0x108] sm:$0xff]   ;;  %v3094_v53 = vld [vmem:[%s3544_s6 + $0x110] sm:$0xff]   ;;  %v3096_v55 = vld [vmem:[%s3544_s6 + $0x118] sm:$0xff]  }
  0x87   : > { %2676 = vmatmul.mubr.msk.bf16.gmra.mxu0 %vm697_vm3, %v3054_v13  ;;  %2732 = vmatmul.mubr.msk.bf16.gmra.mxu1 %vm697_vm3, %v3055_v14  ;;  %v3097_v56 = vld [vmem:[%s3544_s6 + $0x180] sm:$0xff]   ;;  %v3099_v58 = vld [vmem:[%s3544_s6 + $0x188] sm:$0xff]   ;;  %v3101_v60 = vld [vmem:[%s3544_s6 + $0x190] sm:$0xff]  }
  0x88   : > { %2679 = vmatprep.mubr.msk.bf16.mxu0 %vm3262_vm2, %v3260_v4  ;;  %2735 = vmatprep.mubr.msk.bf16.mxu1 %vm3262_vm2, %v3260_v4  ;;  %v3098_v57 = vld [vmem:[%s3544_s6 + $0x120] sm:$0xff]   ;;  %v3100_v59 = vld [vmem:[%s3544_s6 + $0x128] sm:$0xff]   ;;  %v3102_v5 = vld [vmem:[%s3544_s6 + $0x130] sm:$0xff]  }
  0x89   : > { %v3103_v6 = vld [vmem:[%s3544_s6 + $0x198] sm:$0xff]  }
  0x8f   : > { %2680 = vmatmul.mubr.msk.bf16.gmra.mxu0 %vm697_vm3, %v3056_v15  ;;  %2736 = vmatmul.mubr.msk.bf16.gmra.mxu1 %vm697_vm3, %v3057_v16 }
  0x90   : > { %2683 = vmatprep.mubr.msk.bf16.mxu0 %vm3262_vm2, %v3260_v4  ;;  %2739 = vmatprep.mubr.msk.bf16.mxu1 %vm3262_vm2, %v3260_v4 }
  0x97   : > { %2684 = vmatmul.mubr.msk.bf16.gmra.mxu0 %vm697_vm3, %v3058_v17  ;;  %2740 = vmatmul.mubr.msk.bf16.gmra.mxu1 %vm697_vm3, %v3059_v18 }
  0x98   : > { %2687 = vmatprep.mubr.msk.bf16.mxu0 %vm3262_vm2, %v3260_v4  ;;  %2743 = vmatprep.mubr.msk.bf16.mxu1 %vm3262_vm2, %v3260_v4 }
  0x9f   : > { %2688 = vmatmul.mubr.msk.bf16.gmra.mxu0 %vm697_vm3, %v3060_v19  ;;  %2744 = vmatmul.mubr.msk.bf16.gmra.mxu1 %vm697_vm3, %v3061_v20 }
  0xa0   : > { %2691 = vmatprep.mubr.msk.bf16.mxu0 %vm3262_vm2, %v3260_v4  ;;  %2747 = vmatprep.mubr.msk.bf16.mxu1 %vm3262_vm2, %v3260_v4 }
  0xa7   : > { %2692 = vmatmul.mubr.msk.bf16.gmra.mxu0 %vm697_vm3, %v3062_v21  ;;  %2748 = vmatmul.mubr.msk.bf16.gmra.mxu1 %vm697_vm3, %v3063_v22 }
  0xa8   : > { %2695 = vmatprep.mubr.msk.bf16.mxu0 %vm3262_vm2, %v3260_v4  ;;  %2751 = vmatprep.mubr.msk.bf16.mxu1 %vm3262_vm2, %v3260_v4 }
  0xaf   : > { %2696 = vmatmul.mubr.msk.bf16.gmra.mxu0 %vm697_vm3, %v3064_v23  ;;  %2752 = vmatmul.mubr.msk.bf16.gmra.mxu1 %vm697_vm3, %v3065_v24 }
  0xb0   : > { %2699 = vmatprep.mubr.msk.bf16.mxu0 %vm3262_vm2, %v3260_v4  ;;  %2755 = vmatprep.mubr.msk.bf16.mxu1 %vm3262_vm2, %v3260_v4 }
  0xb7   : > { %2700 = vmatmul.mubr.msk.bf16.gmra.mxu0 %vm697_vm3, %v3066_v25  ;;  %2756 = vmatmul.mubr.msk.bf16.gmra.mxu1 %vm697_vm3, %v3067_v26 }
  0xb8   : > { %2703 = vmatprep.mubr.msk.bf16.mxu0 %vm3262_vm2, %v3260_v4  ;;  %2759 = vmatprep.mubr.msk.bf16.mxu1 %vm3262_vm2, %v3260_v4 }
  0xbf   : > { %2704 = vmatmul.mubr.msk.bf16.gmra.mxu0 %vm697_vm3, %v3068_v27  ;;  %2760 = vmatmul.mubr.msk.bf16.gmra.mxu1 %vm697_vm3, %v3069_v28 }
  0xc0   : > { %2707 = vmatprep.mubr.msk.bf16.mxu0 %vm3262_vm2, %v3260_v4  ;;  %2763 = vmatprep.mubr.msk.bf16.mxu1 %vm3262_vm2, %v3260_v4 }
  0xc7   : > { %2708 = vmatmul.mubr.msk.bf16.gmra.mxu0 %vm697_vm3, %v3070_v29  ;;  %2764 = vmatmul.mubr.msk.bf16.gmra.mxu1 %vm697_vm3, %v3071_v30 }
  0xc8   : > { %2711 = vmatprep.mubr.msk.bf16.mxu0 %vm3262_vm2, %v3260_v4  ;;  %2767 = vmatprep.mubr.msk.bf16.mxu1 %vm3262_vm2, %v3260_v4 }
  0xcf   : > { %2712 = vmatmul.mubr.msk.bf16.gmra.mxu0 %vm697_vm3, %v3072_v31  ;;  %2768 = vmatmul.mubr.msk.bf16.gmra.mxu1 %vm697_vm3, %v3073_v32 }
  0xd0   : > { %2715 = vmatprep.mubr.msk.bf16.mxu0 %vm3262_vm2, %v3260_v4  ;;  %2771 = vmatprep.mubr.msk.bf16.mxu1 %vm3262_vm2, %v3260_v4 }
  0xd7   : > { %2716 = vmatmul.mubr.msk.bf16.gmra.mxu0 %vm697_vm3, %v3074_v33  ;;  %2772 = vmatmul.mubr.msk.bf16.gmra.mxu1 %vm697_vm3, %v3075_v34 }
  0xd8   : > { %2719 = vmatprep.mubr.msk.bf16.mxu0 %vm3262_vm2, %v3260_v4  ;;  %2775 = vmatprep.mubr.msk.bf16.mxu1 %vm3262_vm2, %v3260_v4 }
  0xdf   : > { %2720 = vmatmul.mubr.msk.bf16.gmra.mxu0 %vm697_vm3, %v3076_v35  ;;  %2776 = vmatmul.mubr.msk.bf16.gmra.mxu1 %vm697_vm3, %v3077_v36 }
  0xe0   : > { %2783 = vmatprep.mubr.msk.bf16.mxu0 %vm3262_vm2, %v3260_v4  ;;  %2839 = vmatprep.mubr.msk.bf16.mxu1 %vm3262_vm2, %v3260_v4 }
  0xe7   : > { %2784 = vmatmul.mubr.msk.bf16.vlgmr.msra.gmra.mxu0 %vm697_vm3, %v3078_v37  ;;  %2840 = vmatmul.mubr.msk.bf16.vlgmr.msra.gmra.mxu1 %vm697_vm3, %v3079_v38 }
  0xe8   : > { %2787 = vmatprep.mubr.msk.bf16.mxu0 %vm3262_vm2, %v3260_v4  ;;  %2843 = vmatprep.mubr.msk.bf16.mxu1 %vm3262_vm2, %v3260_v4 }
  0xef   : > { %2788 = vmatmul.mubr.msk.bf16.gmra.mxu0 %vm697_vm3, %v3080_v39  ;;  %2844 = vmatmul.mubr.msk.bf16.gmra.mxu1 %vm697_vm3, %v3081_v40 }
  0xf0   : > { %2791 = vmatprep.mubr.msk.bf16.mxu0 %vm3262_vm2, %v3260_v4  ;;  %2847 = vmatprep.mubr.msk.bf16.mxu1 %vm3262_vm2, %v3260_v4 }
  0xf7   : > { %2792 = vmatmul.mubr.msk.bf16.gmra.mxu0 %vm697_vm3, %v3082_v41  ;;  %2848 = vmatmul.mubr.msk.bf16.gmra.mxu1 %vm697_vm3, %v3083_v42 }
  0xf8   : > { %2795 = vmatprep.mubr.msk.bf16.mxu0 %vm3262_vm2, %v3260_v4  ;;  %2851 = vmatprep.mubr.msk.bf16.mxu1 %vm3262_vm2, %v3260_v4 }
  0xff   : > { %2796 = vmatmul.mubr.msk.bf16.gmra.mxu0 %vm697_vm3, %v3084_v43  ;;  %2852 = vmatmul.mubr.msk.bf16.gmra.mxu1 %vm697_vm3, %v3085_v44 }
 0x100   : > { %2799 = vmatprep.mubr.msk.bf16.mxu0 %vm3262_vm2, %v3260_v4  ;;  %2855 = vmatprep.mubr.msk.bf16.mxu1 %vm3262_vm2, %v3260_v4 }
 0x107   : > { %2800 = vmatmul.mubr.msk.bf16.gmra.mxu0 %vm697_vm3, %v3086_v45  ;;  %2856 = vmatmul.mubr.msk.bf16.gmra.mxu1 %vm697_vm3, %v3087_v46 }
 0x108   : > { %2803 = vmatprep.mubr.msk.bf16.mxu0 %vm3262_vm2, %v3260_v4  ;;  %2859 = vmatprep.mubr.msk.bf16.mxu1 %vm3262_vm2, %v3260_v4 }
 0x10f   : > { %2804 = vmatmul.mubr.msk.bf16.gmra.mxu0 %vm697_vm3, %v3088_v47  ;;  %2860 = vmatmul.mubr.msk.bf16.gmra.mxu1 %vm697_vm3, %v3089_v48 }
 0x110   : > { %2807 = vmatprep.mubr.msk.bf16.mxu0 %vm3262_vm2, %v3260_v4  ;;  %2863 = vmatprep.mubr.msk.bf16.mxu1 %vm3262_vm2, %v3260_v4 }
 0x117   : > { %2808 = vmatmul.mubr.msk.bf16.gmra.mxu0 %vm697_vm3, %v3090_v49  ;;  %2864 = vmatmul.mubr.msk.bf16.gmra.mxu1 %vm697_vm3, %v3091_v50 }
 0x118   : > { %2811 = vmatprep.mubr.msk.bf16.mxu0 %vm3262_vm2, %v3260_v4  ;;  %2867 = vmatprep.mubr.msk.bf16.mxu1 %vm3262_vm2, %v3260_v4 }
 0x11f   : > { %2812 = vmatmul.mubr.msk.bf16.gmra.mxu0 %vm697_vm3, %v3092_v51  ;;  %2868 = vmatmul.mubr.msk.bf16.gmra.mxu1 %vm697_vm3, %v3093_v52 }
 0x120   : > { %2815 = vmatprep.mubr.msk.bf16.mxu0 %vm3262_vm2, %v3260_v4  ;;  %2871 = vmatprep.mubr.msk.bf16.mxu1 %vm3262_vm2, %v3260_v4 }
 0x127   : > { %2816 = vmatmul.mubr.msk.bf16.gmra.mxu0 %vm697_vm3, %v3094_v53  ;;  %2872 = vmatmul.mubr.msk.bf16.gmra.mxu1 %vm697_vm3, %v3095_v54 }
 0x128   : > { %2819 = vmatprep.mubr.msk.bf16.mxu0 %vm3262_vm2, %v3260_v4  ;;  %2875 = vmatprep.mubr.msk.bf16.mxu1 %vm3262_vm2, %v3260_v4 }
 0x12f   : > { %2820 = vmatmul.mubr.msk.bf16.gmra.mxu0 %vm697_vm3, %v3096_v55  ;;  %2876 = vmatmul.mubr.msk.bf16.gmra.mxu1 %vm697_vm3, %v3097_v56 }
 0x130   : > { %2823 = vmatprep.mubr.msk.bf16.mxu0 %vm3262_vm2, %v3260_v4  ;;  %2879 = vmatprep.mubr.msk.bf16.mxu1 %vm3262_vm2, %v3260_v4 }
 0x137   : > { %2824 = vmatmul.mubr.msk.bf16.gmra.mxu0 %vm697_vm3, %v3098_v57  ;;  %2880 = vmatmul.mubr.msk.bf16.gmra.mxu1 %vm697_vm3, %v3099_v58 }
 0x138   : > { %2827 = vmatprep.mubr.msk.bf16.mxu0 %vm3262_vm2, %v3260_v4  ;;  %2883 = vmatprep.mubr.msk.bf16.mxu1 %vm3262_vm2, %v3260_v4 }
 0x13f   : > { %v3746_v61 = vpop.f32.mrf.mxu0  ;;  %v3748_v62 = vpop.f32.mrf.mxu1  ;;  %2828 = vmatmul.mubr.msk.bf16.gmra.mxu0 %vm697_vm3, %v3100_v59  ;;  %2884 = vmatmul.mubr.msk.bf16.gmra.mxu1 %vm697_vm3, %v3101_v60 }
 0x140   : > { %v1149_v63 = vmax.f32 %v3746_v61, %v3748_v62  ;;  %2831 = vmatprep.mubr.msk.bf16.mxu0 %vm3262_vm2, %v3260_v4  ;;  %2887 = vmatprep.mubr.msk.bf16.mxu1 %vm3262_vm2, %v3260_v4 }
 0x141   : > { %v2673_v0 = vpop.f32.mrf.mxu0  ;;  %v2729_v1 = vpop.f32.mrf.mxu1 }
 0x143   : > { %v3758_v2 = vpop.f32.mrf.mxu0  ;;  %v3760_v3 = vpop.f32.mrf.mxu1 }
 0x145   : > { %v2674_v8 = vpop.f32.mrf.mxu0  ;;  %v2730_v9 = vpop.f32.mrf.mxu1 }
 0x147   : > { %v3766_v10 = vpop.f32.mrf.mxu0  ;;  %v3768_v11 = vpop.f32.mrf.mxu1  ;;  %2832 = vmatmul.mubr.msk.bf16.gmra.mxu0 %vm697_vm3, %v3102_v5  ;;  %2888 = vmatmul.mubr.msk.bf16.gmra.mxu1 %vm697_vm3, %v3103_v6 }
 0x149   : > { %v2677_v12 = vpop.f32.mrf.mxu0  ;;  %v2733_v13 = vpop.f32.mrf.mxu1 }
 0x14b   : > { %v3774_v14 = vpop.f32.mrf.mxu0  ;;  %v3776_v15 = vpop.f32.mrf.mxu1 }
 0x14d   : > { %v2678_v17 = vpop.f32.mrf.mxu0  ;;  %v2734_v18 = vpop.f32.mrf.mxu1 }
 0x14f   : > { %v3780_v19 = vpop.f32.mrf.mxu0  ;;  %v3782_v20 = vpop.f32.mrf.mxu1 }
 0x151   : > { %v2681_v22 = vpop.f32.mrf.mxu0  ;;  %v2737_v23 = vpop.f32.mrf.mxu1 }
 0x153   : > { %v3786_v24 = vpop.f32.mrf.mxu0  ;;  %v3788_v25 = vpop.f32.mrf.mxu1 }
 0x155   : > { %v2682_v27 = vpop.f32.mrf.mxu0  ;;  %v2738_v28 = vpop.f32.mrf.mxu1 }
 0x157   : > { %v3792_v29 = vpop.f32.mrf.mxu0  ;;  %v3794_v30 = vpop.f32.mrf.mxu1 }
 0x159   : > { %v2685_v32 = vpop.f32.mrf.mxu0  ;;  %v2741_v33 = vpop.f32.mrf.mxu1 }
 0x15b   : > { %v3798_v34 = vpop.f32.mrf.mxu0  ;;  %v3800_v35 = vpop.f32.mrf.mxu1 }
 0x15d   : > { %v2686_v37 = vpop.f32.mrf.mxu0  ;;  %v2742_v38 = vpop.f32.mrf.mxu1 }
 0x15f   : > { %v3804_v39 = vpop.f32.mrf.mxu0  ;;  %v3806_v40 = vpop.f32.mrf.mxu1 }
 0x161   : > { %v2689_v42 = vpop.f32.mrf.mxu0  ;;  %v2745_v43 = vpop.f32.mrf.mxu1 }
 0x163   : > { %v3810_v44 = vpop.f32.mrf.mxu0  ;;  %v3812_v45 = vpop.f32.mrf.mxu1 }
 0x165   : > { %v2690_v47 = vpop.f32.mrf.mxu0  ;;  %v2746_v48 = vpop.f32.mrf.mxu1 }
 0x167   : > { %v3816_v49 = vpop.f32.mrf.mxu0  ;;  %v3818_v50 = vpop.f32.mrf.mxu1 }
 0x169   : > { %v2693_v52 = vpop.f32.mrf.mxu0  ;;  %v2749_v53 = vpop.f32.mrf.mxu1 }
 0x16b   : > { %v3822_v54 = vpop.f32.mrf.mxu0  ;;  %v3824_v55 = vpop.f32.mrf.mxu1 }
 0x16d   : > { %v2694_v57 = vpop.f32.mrf.mxu0  ;;  %v2750_v58 = vpop.f32.mrf.mxu1 }
 0x16f   : > { %v3828_v59 = vpop.f32.mrf.mxu0  ;;  %v3830_v60 = vpop.f32.mrf.mxu1 }
 0x171   : > { %v2697_v1 = vpop.f32.mrf.mxu0  ;;  %v2753_v5 = vpop.f32.mrf.mxu1 }
 0x173   : > { %v3834_v6 = vpop.f32.mrf.mxu0  ;;  %v3836_v8 = vpop.f32.mrf.mxu1 }
 0x175   : > { %v2698_v12 = vpop.f32.mrf.mxu0  ;;  %v2754_v13 = vpop.f32.mrf.mxu1 }
 0x177   : > { %v3840_v17 = vpop.f32.mrf.mxu0  ;;  %v3842_v18 = vpop.f32.mrf.mxu1 }
 0x179   : > { %v2701_v23 = vpop.f32.mrf.mxu0  ;;  %v2757_v27 = vpop.f32.mrf.mxu1 }
 0x17b   : > { %v3846_v28 = vpop.f32.mrf.mxu0  ;;  %v3848_v32 = vpop.f32.mrf.mxu1 }
 0x17d   : > { %v2702_v37 = vpop.f32.mrf.mxu0  ;;  %v2758_v38 = vpop.f32.mrf.mxu1 }
 0x17f   : > { %v3852_v42 = vpop.f32.mrf.mxu0  ;;  %v3854_v43 = vpop.f32.mrf.mxu1 }
 0x181   : > { %v2705_v48 = vpop.f32.mrf.mxu0  ;;  %v2761_v52 = vpop.f32.mrf.mxu1 }
 0x183   : > { %v3858_v53 = vpop.f32.mrf.mxu0  ;;  %v3860_v57 = vpop.f32.mrf.mxu1 }
 0x185   : > { %v2706_v1 = vpop.f32.mrf.mxu0  ;;  %v2762_v5 = vpop.f32.mrf.mxu1 }
 0x187   : > { %v3864_v12 = vpop.f32.mrf.mxu0  ;;  %v3866_v13 = vpop.f32.mrf.mxu1 }
 0x189   : > { %v2709_v27 = vpop.f32.mrf.mxu0  ;;  %v2765_v37 = vpop.f32.mrf.mxu1 }
 0x18b   : > { %v3870_v38 = vpop.f32.mrf.mxu0  ;;  %v3872_v48 = vpop.f32.mrf.mxu1 }
 0x18d   : > { %v2710_v47 = vpop.f32.mrf.mxu0  ;;  %v2766_v58 = vpop.f32.mrf.mxu1 }
 0x18f   : > { %v3876_v1 = vpop.f32.mrf.mxu0  ;;  %v3878_v5 = vpop.f32.mrf.mxu1 }
 0x191   : > { %v2713_v22 = vpop.f32.mrf.mxu0  ;;  %v2769_v23 = vpop.f32.mrf.mxu1 }
 0x193   : > { %v3882_v27 = vpop.f32.mrf.mxu0  ;;  %v3884_v37 = vpop.f32.mrf.mxu1 }
 0x195   : > { %v2714_v0 = vpop.f32.mrf.mxu0  ;;  %v2770_v52 = vpop.f32.mrf.mxu1 }
 0x197   : > { %v3888_v47 = vpop.f32.mrf.mxu0  ;;  %v3890_v58 = vpop.f32.mrf.mxu1 }
 0x199   : > { %v2717_v51 = vpop.f32.mrf.mxu0  ;;  %v2773_v33 = vpop.f32.mrf.mxu1 }
 0x19b   : > { %v3894_v22 = vpop.f32.mrf.mxu0  ;;  %v3896_v23 = vpop.f32.mrf.mxu1 }
 0x19d   : > { %v2718_v41 = vpop.f32.mrf.mxu0  ;;  %v2774_v9 = vpop.f32.mrf.mxu1 }
 0x19f   : > { %v3900_v0 = vpop.f32.mrf.mxu0  ;;  %v3902_v52 = vpop.f32.mrf.mxu1 }
 0x1a0   : > { %4209 = vst [vmem:[#allocation4_spill] sm:$0xff] %v3900_v0  ;;  %4210 = vst [vmem:[#allocation5_spill] sm:$0xff] %v3902_v52 }
 0x1a1   : > { %v2721_v56 = vpop.f32.mrf.mxu0  ;;  %v2777_v51 = vpop.f32.mrf.mxu1 }
 0x1a2   : > { %v3918_v56 = vld [vmem:[%s4197_s2] ss:$0 sm:$0xff] }
 0x1a3   : > { %v3906_v33 = vpop.f32.mrf.mxu0  ;;  %v3908_v31 = vpop.f32.mrf.mxu1 }
 0x1a4   : > { %4211 = vst [vmem:[#allocation6_spill] sm:$0xff] %v3906_v33  ;;  %4212 = vst [vmem:[#allocation7_spill] sm:$0xff] %v3908_v31 }
 0x1a5   : > { %v2722_v46 = vpop.f32.mrf.mxu0  ;;  %v2778_v41 = vpop.f32.mrf.mxu1 }
 0x1a6   : > { %v4213_v41 = vmax.f32 %v3758_v2, %v3760_v3 }
 0x1a7   : > { %v1340_v9 = vpop.f32.mrf.mxu0  ;;  %v1634_v21 = vpop.f32.mrf.mxu1 }
 0x1a8   : > { %v1443_v16 = vmax.f32 %v1149_v63, %v1340_v9 }
 0x1a9   : > { %v2785_v51 = vpop.f32.mrf.mxu0  ;;  %v2841_v36 = vpop.f32.mrf.mxu1 }
 0x1aa   : > { %v1737_v4 = vmax.f32 %v1443_v16, %v1634_v21  ;;  %v4214_v21 = vmax.f32 %v3766_v10, %v3768_v11  ;;  %v4215_v10 = vmax.f32 %v3774_v14, %v3776_v15 }
 0x1ab   : > { %v1343_v7 = vpop.f32.mrf.mxu0  ;;  %v1637_v26 = vpop.f32.mrf.mxu1 }
 0x1ac   : > { %v1770_v46 = vadd.f32 %v3918_v56, %v1737_v4  ;;  %v1444_v31 = vmax.f32 %v4213_v41, %v1343_v7 }
 0x1ad   : > { %v2786_v61 = vpop.f32.mrf.mxu0  ;;  %v2842_v62 = vpop.f32.mrf.mxu1 }
 0x1ae   : > { %v1796_v63 = vmax.f32 %v1770_v46, 0.0  ;;  %v1738_v9 = vmax.f32 %v1444_v31, %v1637_v26 }
 0x1af   : > { %v1348_v33 = vpop.f32.mrf.mxu0  ;;  %v1642_v52 = vpop.f32.mrf.mxu1 }
 0x1b0   : > { %v2580_v51 = vpack.c.bf16 %v1796_v63, %v1796_v63  ;;  %v1771_v16 = vadd.f32 %v3918_v56, %v1738_v9  ;;  %v1445_v36 = vmax.f32 %v4214_v21, %v1348_v33 }
 0x1b1   : > { %v2789_v0 = vpop.f32.mrf.mxu0  ;;  %v2845_v4 = vpop.f32.mrf.mxu1 }
 0x1b2   : > { %1927 = vst.msk [vmem:[%s3930_s12] sm:$0xf] %vm1926_vm4, %v2580_v51  ;;  %v1797_v2 = vmax.f32 %v1771_v16, 0.0  ;;  %v1739_v3 = vmax.f32 %v1445_v36, %v1642_v52  ;;  %v4216_v51 = vmax.f32 %v3780_v19, %v3782_v20 }
 0x1b3   : > { %v1351_v7 = vpop.f32.mrf.mxu0  ;;  %v1645_v26 = vpop.f32.mrf.mxu1 }
 0x1b4   : > { %v2581_v31 = vpack.c.bf16 %v1797_v2, %v1797_v2  ;;  %v1772_v46 = vadd.f32 %v3918_v56, %v1739_v3  ;;  %v1446_v11 = vmax.f32 %v4215_v10, %v1351_v7 }
 0x1b5   : > { %v2790_v0 = vpop.f32.mrf.mxu0  ;;  %v2846_v33 = vpop.f32.mrf.mxu1 }
 0x1b6   : > { %1928 = vst.msk [vmem:[%s3930_s12 + $0x4] sm:$0xf] %vm1926_vm4, %v2581_v31  ;;  %v1798_v41 = vmax.f32 %v1772_v46, 0.0  ;;  %v1740_v61 = vmax.f32 %v1446_v11, %v1645_v26  ;;  %v4217_v26 = vmax.f32 %v3786_v24, %v3788_v25 }
 0x1b7   : > { %v1356_v62 = vpop.f32.mrf.mxu0  ;;  %v1650_v63 = vpop.f32.mrf.mxu1 }
 0x1b8   : > { %v2582_v52 = vpack.c.bf16 %v1798_v41, %v1798_v41  ;;  %v1773_v9 = vadd.f32 %v3918_v56, %v1740_v61  ;;  %v1447_v16 = vmax.f32 %v4216_v51, %v1356_v62  ;;  %v4218_v61 = vmax.f32 %v3792_v29, %v3794_v30 }
 0x1b9   : > { %v2793_v21 = vpop.f32.mrf.mxu0  ;;  %v2849_v36 = vpop.f32.mrf.mxu1 }
 0x1ba   : > { %1929 = vst.msk [vmem:[%s3930_s12 + $0x8] sm:$0xf] %vm1926_vm4, %v2582_v52  ;;  %v1799_v14 = vmax.f32 %v1773_v9, 0.0  ;;  %v1741_v15 = vmax.f32 %v1447_v16, %v1650_v63  ;;  %v4219_v36 = vmax.f32 %v3798_v34, %v3800_v35 }
 0x1bb   : > { %v1359_v4 = vpop.f32.mrf.mxu0  ;;  %v1653_v2 = vpop.f32.mrf.mxu1 }
 0x1bc   : > { %v2583_v3 = vpack.c.bf16 %v1799_v14, %v1799_v14  ;;  %v1774_v7 = vadd.f32 %v3918_v56, %v1741_v15  ;;  %v1448_v31 = vmax.f32 %v4217_v26, %v1359_v4 }
 0x1bd   : > { %v2794_v46 = vpop.f32.mrf.mxu0  ;;  %v2850_v10 = vpop.f32.mrf.mxu1 }
 0x1be   : > { %1930 = vst.msk [vmem:[%s3930_s12 + $0xc] sm:$0xf] %vm1926_vm4, %v2583_v3  ;;  %v1800_v19 = vmax.f32 %v1774_v7, 0.0  ;;  %v1742_v20 = vmax.f32 %v1448_v31, %v1653_v2  ;;  %v4220_v31 = vmax.f32 %v3804_v39, %v3806_v40 }
 0x1bf   : > { %v1364_v11 = vpop.f32.mrf.mxu0  ;;  %v1658_v0 = vpop.f32.mrf.mxu1 }
 0x1c0   : > { %v2584_v33 = vpack.c.bf16 %v1800_v19, %v1800_v19  ;;  %v1775_v41 = vadd.f32 %v3918_v56, %v1742_v20  ;;  %v1449_v62 = vmax.f32 %v4218_v61, %v1364_v11 }
 0x1c1   : > { %v2797_v63 = vpop.f32.mrf.mxu0  ;;  %v2853_v52 = vpop.f32.mrf.mxu1 }
 0x1c2   : > { %1931 = vst.msk [vmem:[%s3930_s12 + $0x10] sm:$0xf] %vm1926_vm4, %v2584_v33  ;;  %v1801_v24 = vmax.f32 %v1775_v41, 0.0  ;;  %v1743_v25 = vmax.f32 %v1449_v62, %v1658_v0  ;;  %v4221_v41 = vmax.f32 %v3810_v44, %v3812_v45 }
 0x1c3   : > { %v1367_v9 = vpop.f32.mrf.mxu0  ;;  %v1661_v51 = vpop.f32.mrf.mxu1 }
 0x1c4   : > { %v2585_v16 = vpack.c.bf16 %v1801_v24, %v1801_v24  ;;  %v1776_v21 = vadd.f32 %v3918_v56, %v1743_v25  ;;  %v1450_v14 = vmax.f32 %v4219_v36, %v1367_v9 }
 0x1c5   : > { %v2798_v15 = vpop.f32.mrf.mxu0  ;;  %v2854_v4 = vpop.f32.mrf.mxu1 }
 0x1c6   : > { %1932 = vst.msk [vmem:[%s3930_s12 + $0x14] sm:$0xf] %vm1926_vm4, %v2585_v16  ;;  %v1802_v29 = vmax.f32 %v1776_v21, 0.0  ;;  %v1744_v30 = vmax.f32 %v1450_v14, %v1661_v51  ;;  %v4222_v51 = vmax.f32 %v3816_v49, %v3818_v50 }
 0x1c7   : > { %v1372_v2 = vpop.f32.mrf.mxu0  ;;  %v1666_v3 = vpop.f32.mrf.mxu1 }
 0x1c8   : > { %v2586_v7 = vpack.c.bf16 %v1802_v29, %v1802_v29  ;;  %v1777_v26 = vadd.f32 %v3918_v56, %v1744_v30  ;;  %v1451_v46 = vmax.f32 %v4220_v31, %v1372_v2  ;;  %v4223_v30 = vmax.f32 %v3822_v54, %v3824_v55 }
 0x1c9   : > { %v2801_v10 = vpop.f32.mrf.mxu0  ;;  %v2857_v19 = vpop.f32.mrf.mxu1 }
 0x1ca   : > { %1933 = vst.msk [vmem:[%s3930_s12 + $0x18] sm:$0xf] %vm1926_vm4, %v2586_v7  ;;  %v1803_v34 = vmax.f32 %v1777_v26, 0.0  ;;  %v1745_v35 = vmax.f32 %v1451_v46, %v1666_v3  ;;  %v4224_v19 = vmax.f32 %v3828_v59, %v3830_v60 }
 0x1cb   : > { %v1375_v20 = vpop.f32.mrf.mxu0  ;;  %v1669_v11 = vpop.f32.mrf.mxu1 }
 0x1cc   : > { %v2587_v0 = vpack.c.bf16 %v1803_v34, %v1803_v34  ;;  %v1778_v33 = vadd.f32 %v3918_v56, %v1745_v35  ;;  %v1452_v61 = vmax.f32 %v4221_v41, %v1375_v20 }
 0x1cd   : > { %v2802_v62 = vpop.f32.mrf.mxu0  ;;  %v2858_v63 = vpop.f32.mrf.mxu1 }
 0x1ce   : > { %1934 = vst.msk [vmem:[%s3930_s12 + $0x1c] sm:$0xf] %vm1926_vm4, %v2587_v0  ;;  %v1804_v39 = vmax.f32 %v1778_v33, 0.0  ;;  %v1746_v40 = vmax.f32 %v1452_v61, %v1669_v11  ;;  %v4225_v61 = vmax.f32 %v3834_v6, %v3836_v8 }
 0x1cf   : > { %v1380_v52 = vpop.f32.mrf.mxu0  ;;  %v1674_v24 = vpop.f32.mrf.mxu1 }
 0x1d0   : > { %v2588_v25 = vpack.c.bf16 %v1804_v39, %v1804_v39  ;;  %v1779_v9 = vadd.f32 %v3918_v56, %v1746_v40  ;;  %v1453_v16 = vmax.f32 %v4222_v51, %v1380_v52 }
 0x1d1   : > { %v2805_v21 = vpop.f32.mrf.mxu0  ;;  %v2861_v36 = vpop.f32.mrf.mxu1 }
 0x1d2   : > { %1935 = vst.msk [vmem:[%s3930_s12 + $0x20] sm:$0xf] %vm1926_vm4, %v2588_v25  ;;  %v1805_v44 = vmax.f32 %v1779_v9, 0.0  ;;  %v1747_v45 = vmax.f32 %v1453_v16, %v1674_v24  ;;  %v4226_v9 = vmax.f32 %v3840_v17, %v3842_v18 }
 0x1d3   : > { %v1383_v14 = vpop.f32.mrf.mxu0  ;;  %v1677_v15 = vpop.f32.mrf.mxu1 }
 0x1d4   : > { %v2589_v4 = vpack.c.bf16 %v1805_v44, %v1805_v44  ;;  %v1780_v29 = vadd.f32 %v3918_v56, %v1747_v45  ;;  %v1454_v2 = vmax.f32 %v4223_v30, %v1383_v14 }
 0x1d5   : > { %v2806_v3 = vpop.f32.mrf.mxu0  ;;  %v2862_v7 = vpop.f32.mrf.mxu1 }
 0x1d6   : > { %1936 = vst.msk [vmem:[%s3930_s12 + $0x24] sm:$0xf] %vm1926_vm4, %v2589_v4  ;;  %v1806_v49 = vmax.f32 %v1780_v29, 0.0  ;;  %v1748_v50 = vmax.f32 %v1454_v2, %v1677_v15  ;;  %v4227_v15 = vmax.f32 %v3846_v28, %v3848_v32 }
 0x1d7   : > { %v1388_v26 = vpop.f32.mrf.mxu0  ;;  %v1682_v31 = vpop.f32.mrf.mxu1 }
 0x1d8   : > { %v2590_v46 = vpack.c.bf16 %v1806_v49, %v1806_v49  ;;  %v1781_v10 = vadd.f32 %v3918_v56, %v1748_v50  ;;  %v1455_v34 = vmax.f32 %v4224_v19, %v1388_v26  ;;  %v4228_v50 = vmax.f32 %v3852_v42, %v3854_v43 }
 0x1d9   : > { %v2809_v35 = vpop.f32.mrf.mxu0  ;;  %v2865_v20 = vpop.f32.mrf.mxu1 }
 0x1da   : > { %1937 = vst.msk [vmem:[%s3930_s12 + $0x28] sm:$0xf] %vm1926_vm4, %v2590_v46  ;;  %v1807_v54 = vmax.f32 %v1781_v10, 0.0  ;;  %v1749_v55 = vmax.f32 %v1455_v34, %v1682_v31  ;;  %v4229_v20 = vmax.f32 %v3858_v53, %v3860_v57 }
 0x1db   : > { %v1391_v11 = vpop.f32.mrf.mxu0  ;;  %v1685_v0 = vpop.f32.mrf.mxu1 }
 0x1dc   : > { %v2591_v33 = vpack.c.bf16 %v1807_v54, %v1807_v54  ;;  %v1782_v41 = vadd.f32 %v3918_v56, %v1749_v55  ;;  %v1456_v62 = vmax.f32 %v4225_v61, %v1391_v11 }
 0x1dd   : > { %v2810_v63 = vpop.f32.mrf.mxu0  ;;  %v2866_v39 = vpop.f32.mrf.mxu1 }
 0x1de   : > { %1938 = vst.msk [vmem:[%s3930_s12 + $0x2c] sm:$0xf] %vm1926_vm4, %v2591_v33  ;;  %v1808_v59 = vmax.f32 %v1782_v41, 0.0  ;;  %v1750_v60 = vmax.f32 %v1456_v62, %v1685_v0  ;;  %v4230_v62 = vmax.f32 %v3864_v12, %v3866_v13 }
 0x1df   : > { %v1396_v40 = vpop.f32.mrf.mxu0  ;;  %v1690_v52 = vpop.f32.mrf.mxu1 }
 0x1e0   : > { %v2592_v24 = vpack.c.bf16 %v1808_v59, %v1808_v59  ;;  %v1783_v25 = vadd.f32 %v3918_v56, %v1750_v60  ;;  %v1457_v51 = vmax.f32 %v4226_v9, %v1396_v40 }
 0x1e1   : > { %v2813_v16 = vpop.f32.mrf.mxu0  ;;  %v2869_v21 = vpop.f32.mrf.mxu1 }
 0x1e2   : > { %1939 = vst.msk [vmem:[%s3930_s12 + $0x30] sm:$0xf] %vm1926_vm4, %v2592_v24  ;;  %v1809_v6 = vmax.f32 %v1783_v25, 0.0  ;;  %v1751_v8 = vmax.f32 %v1457_v51, %v1690_v52  ;;  %v4231_v25 = vmax.f32 %v3870_v38, %v3872_v48 }
 0x1e3   : > { %v1399_v36 = vpop.f32.mrf.mxu0  ;;  %v1693_v44 = vpop.f32.mrf.mxu1 }
 0x1e4   : > { %v2593_v45 = vpack.c.bf16 %v1809_v6, %v1809_v6  ;;  %v1784_v14 = vadd.f32 %v3918_v56, %v1751_v8  ;;  %v1458_v4 = vmax.f32 %v4227_v15, %v1399_v36 }
 0x1e5   : > { %v2814_v29 = vpop.f32.mrf.mxu0  ;;  %v2870_v30 = vpop.f32.mrf.mxu1 }
 0x1e6   : > { %1940 = vst.msk [vmem:[%s3930_s12 + $0x34] sm:$0xf] %vm1926_vm4, %v2593_v45  ;;  %v1810_v17 = vmax.f32 %v1784_v14, 0.0  ;;  %v1752_v18 = vmax.f32 %v1458_v4, %v1693_v44  ;;  %v4232_v44 = vmax.f32 %v3876_v1, %v3878_v5 }
 0x1e7   : > { %v1404_v2 = vpop.f32.mrf.mxu0  ;;  %v1698_v3 = vpop.f32.mrf.mxu1 }
 0x1e8   : > { %v2594_v7 = vpack.c.bf16 %v1810_v17, %v1810_v17  ;;  %v1785_v49 = vadd.f32 %v3918_v56, %v1752_v18  ;;  %v1459_v26 = vmax.f32 %v4228_v50, %v1404_v2  ;;  %v4233_v18 = vmax.f32 %v3882_v27, %v3884_v37 }
 0x1e9   : > { %v2817_v31 = vpop.f32.mrf.mxu0  ;;  %v2873_v46 = vpop.f32.mrf.mxu1 }
 0x1ea   : > { %1941 = vst.msk [vmem:[%s3930_s12 + $0x38] sm:$0xf] %vm1926_vm4, %v2594_v7  ;;  %v1811_v28 = vmax.f32 %v1785_v49, 0.0  ;;  %v1753_v32 = vmax.f32 %v1459_v26, %v1698_v3  ;;  %v4234_v46 = vmax.f32 %v3888_v47, %v3890_v58 }
 0x1eb   : > { %v1407_v10 = vpop.f32.mrf.mxu0  ;;  %v1701_v19 = vpop.f32.mrf.mxu1 }
 0x1ec   : > { %v2595_v34 = vpack.c.bf16 %v1811_v28, %v1811_v28  ;;  %v1786_v35 = vadd.f32 %v3918_v56, %v1753_v32  ;;  %v1460_v54 = vmax.f32 %v4229_v20, %v1407_v10 }
 0x1ed   : > { %v2818_v55 = vpop.f32.mrf.mxu0  ;;  %v2874_v11 = vpop.f32.mrf.mxu1 }
 0x1ee   : > { %1942 = vst.msk [vmem:[%s3930_s12 + $0x3c] sm:$0xf] %vm1926_vm4, %v2595_v34  ;;  %v1812_v42 = vmax.f32 %v1786_v35, 0.0  ;;  %v1754_v43 = vmax.f32 %v1460_v54, %v1701_v19  ;;  %v4235_v54 = vmax.f32 %v3894_v22, %v3896_v23 }
 0x1ef   : > { %v1412_v0 = vpop.f32.mrf.mxu0  ;;  %v1706_v33 = vpop.f32.mrf.mxu1 }
 0x1f0   : > { %v2596_v41 = vpack.c.bf16 %v1812_v42, %v1812_v42  ;;  %v1787_v61 = vadd.f32 %v3918_v56, %v1754_v43  ;;  %v1461_v63 = vmax.f32 %v4230_v62, %v1412_v0  ;;  %v4237_v62 = vld [vmem:[#allocation5_spill] sm:$0xff] }
 0x1f1   : > { %v2821_v39 = vpop.f32.mrf.mxu0  ;;  %v2877_v59 = vpop.f32.mrf.mxu1 }
 0x1f2   : > { %1943 = vst.msk [vmem:[%s3930_s12 + $0x40] sm:$0xf] %vm1926_vm4, %v2596_v41  ;;  %v1813_v53 = vmax.f32 %v1787_v61, 0.0  ;;  %v1755_v57 = vmax.f32 %v1461_v63, %v1706_v33  ;;  %v4236_v61 = vld [vmem:[#allocation4_spill] sm:$0xff] }
 0x1f3   : > { %v1415_v60 = vpop.f32.mrf.mxu0  ;;  %v1709_v40 = vpop.f32.mrf.mxu1  ;;  %v4238_v63 = vmax.f32 %v4236_v61, %v4237_v62 }
 0x1f4   : > { %v2597_v52 = vpack.c.bf16 %v1813_v53, %v1813_v53  ;;  %v1788_v24 = vadd.f32 %v3918_v56, %v1755_v57  ;;  %v1462_v9 = vmax.f32 %v4231_v25, %v1415_v60  ;;  %v4240_v25 = vld [vmem:[#allocation7_spill] sm:$0xff] }
 0x1f5   : > { %v2822_v51 = vpop.f32.mrf.mxu0  ;;  %v2878_v16 = vpop.f32.mrf.mxu1 }
 0x1f6   : > { %1944 = vst.msk [vmem:[%s3930_s12 + $0x44] sm:$0xf] %vm1926_vm4, %v2597_v52  ;;  %v1814_v12 = vmax.f32 %v1788_v24, 0.0  ;;  %v1756_v13 = vmax.f32 %v1462_v9, %v1709_v40  ;;  %v4239_v24 = vld [vmem:[#allocation6_spill] sm:$0xff] }
 0x1f7   : > { %v1420_v21 = vpop.f32.mrf.mxu0  ;;  %v1714_v6 = vpop.f32.mrf.mxu1  ;;  %v4241_v9 = vmax.f32 %v4239_v24, %v4240_v25 }
 0x1f8   : > { %v2598_v8 = vpack.c.bf16 %v1814_v12, %v1814_v12  ;;  %v1789_v36 = vadd.f32 %v3918_v56, %v1756_v13  ;;  %v1463_v45 = vmax.f32 %v4232_v44, %v1420_v21 }
 0x1f9   : > { %v2825_v14 = vpop.f32.mrf.mxu0  ;;  %v2881_v15 = vpop.f32.mrf.mxu1 }
 0x1fa   : > { %1945 = vst.msk [vmem:[%s3930_s12 + $0x48] sm:$0xf] %vm1926_vm4, %v2598_v8  ;;  %v1815_v38 = vmax.f32 %v1789_v36, 0.0  ;;  %v1757_v48 = vmax.f32 %v1463_v45, %v1714_v6 }
 0x1fb   : > { %v1423_v4 = vpop.f32.mrf.mxu0  ;;  %v1717_v29 = vpop.f32.mrf.mxu1 }
 0x1fc   : > { %v2599_v30 = vpack.c.bf16 %v1815_v38, %v1815_v38  ;;  %v1790_v17 = vadd.f32 %v3918_v56, %v1757_v48  ;;  %v1464_v2 = vmax.f32 %v4233_v18, %v1423_v4 }
 0x1fd   : > { %v2826_v3 = vpop.f32.mrf.mxu0  ;;  %v2882_v7 = vpop.f32.mrf.mxu1 }
 0x1fe   : > { %1946 = vst.msk [vmem:[%s3930_s12 + $0x4c] sm:$0xf] %vm1926_vm4, %v2599_v30  ;;  %v1816_v1 = vmax.f32 %v1790_v17, 0.0  ;;  %v1758_v5 = vmax.f32 %v1464_v2, %v1717_v29 }
 0x1ff   : > { %v1428_v49 = vpop.f32.mrf.mxu0  ;;  %v1722_v50 = vpop.f32.mrf.mxu1 }
 0x200   : > { %v2600_v26 = vpack.c.bf16 %v1816_v1, %v1816_v1  ;;  %v1791_v31 = vadd.f32 %v3918_v56, %v1758_v5  ;;  %v1465_v28 = vmax.f32 %v4234_v46, %v1428_v49 }
 0x201   : > { %v2829_v32 = vpop.f32.mrf.mxu0  ;;  %v2885_v10 = vpop.f32.mrf.mxu1 }
 0x202   : > { %1947 = vst.msk [vmem:[%s3930_s12 + $0x50] sm:$0xf] %vm1926_vm4, %v2600_v26  ;;  %v1817_v27 = vmax.f32 %v1791_v31, 0.0  ;;  %v1759_v37 = vmax.f32 %v1465_v28, %v1722_v50 }
 0x203   : > { %v1431_v19 = vpop.f32.mrf.mxu0  ;;  %v1725_v34 = vpop.f32.mrf.mxu1 }
 0x204   : > { %v2601_v35 = vpack.c.bf16 %v1817_v27, %v1817_v27  ;;  %v1792_v20 = vadd.f32 %v3918_v56, %v1759_v37  ;;  %v1466_v55 = vmax.f32 %v4235_v54, %v1431_v19 }
 0x205   : > { %v2830_v11 = vpop.f32.mrf.mxu0  ;;  %v2886_v42 = vpop.f32.mrf.mxu1 }
 0x206   : > { %1948 = vst.msk [vmem:[%s3930_s12 + $0x54] sm:$0xf] %vm1926_vm4, %v2601_v35  ;;  %v1818_v47 = vmax.f32 %v1792_v20, 0.0  ;;  %v1760_v58 = vmax.f32 %v1466_v55, %v1725_v34 }
 0x207   : > { %v1436_v43 = vpop.f32.mrf.mxu0  ;;  %v1730_v0 = vpop.f32.mrf.mxu1 }
 0x208   : > { %v2602_v33 = vpack.c.bf16 %v1818_v47, %v1818_v47  ;;  %v1793_v41 = vadd.f32 %v3918_v56, %v1760_v58  ;;  %v1467_v39 = vmax.f32 %v4238_v63, %v1436_v43 }
 0x209   : > { %v2833_v59 = vpop.f32.mrf.mxu0  ;;  %v2889_v53 = vpop.f32.mrf.mxu1 }
 0x20a   : > { %1949 = vst.msk [vmem:[%s3930_s12 + $0x58] sm:$0xf] %vm1926_vm4, %v2602_v33  ;;  %v1819_v22 = vmax.f32 %v1793_v41, 0.0  ;;  %v1761_v23 = vmax.f32 %v1467_v39, %v1730_v0 }
 0x20b   : > { %v1439_v57 = vpop.f32.mrf.mxu0  ;;  %v1733_v60 = vpop.f32.mrf.mxu1 }
 0x20c   : > { %v2603_v40 = vpack.c.bf16 %v1819_v22, %v1819_v22  ;;  %v1794_v52 = vadd.f32 %v3918_v56, %v1761_v23  ;;  %v1468_v51 = vmax.f32 %v4241_v9, %v1439_v57 }
 0x20d   : > { %v2834_v16 = vpop.f32.mrf.mxu0  ;;  %v2890_v12 = vpop.f32.mrf.mxu1 }
 0x20e   : > { %1950 = vst.msk [vmem:[%s3930_s12 + $0x5c] sm:$0xf] %vm1926_vm4, %v2603_v40  ;;  %v1820_v13 = vmax.f32 %v1794_v52, 0.0  ;;  %v1762_v21 = vmax.f32 %v1468_v51, %v1733_v60 }
 0x210   : > { %v2604_v6 = vpack.c.bf16 %v1820_v13, %v1820_v13  ;;  %v1795_v8 = vadd.f32 %v3918_v56, %v1762_v21 }
 0x212   : > { %1951 = vst.msk [vmem:[%s3930_s12 + $0x60] sm:$0xf] %vm1926_vm4, %v2604_v6  ;;  %v1821_v36 = vmax.f32 %v1795_v8, 0.0  ;;  %1959 = sbr.rel (!%p3314_p5) target bundleno = 606 (0x25e), region = 98 }
 0x214   : > { %v2605_v44 = vpack.c.bf16 %v1821_v36, %v1821_v36 }
 0x216   : > { %1952 = vst.msk [vmem:[%s3930_s12 + $0x64] sm:$0xf] %vm1926_vm4, %v2605_v44 }
 0x217   : > { %s4255_s17 = smov (!%p1962_p4, %s1961_s17), 26 }
 0x218   : > { %s2565_s23 = sshll.u32 %s4255_s17, 6 }
 0x219   : > { %p2568_p6 = scmp.eq.s32.totalorder %s2565_s23, 0 }
 0x21a   : > { %3104 = sdivrem.u32 (!%p2568_p6), %s4255_s17, 26 }
 0x21b   : > { %1970 = sbr.rel (%p2568_p6) target bundleno = 606 (0x25e), region = 102 }
 0x223   : > { %s4090_s20 = spop.drf %3104 }
 0x224   : > { %p2569_p5 = scmp.le.s32.totalorder %s4090_s20, 0 }
 0x225   : > { %s4242_s15 = smov (!%p2569_p5), %s4084_s22  ;;  %s4243_s25 = smov (!%p2569_p5), %s3930_s12 }
 0x226   : > { %2293 = sbr.rel (%p2569_p5) target bundleno = 581 (0x245), region = 218  ;;  %s4099_s26 = smov (!%p2569_p5), 0  }
 0x227   : > { %s4101_s24 = smov (!%p2569_p5), 0  }
 0x22b LB: >> { %v1988_v56 = vld [vmem:[%s3234_s25] sm:$0xf]  ;;  %v1990_v45 = vld [vmem:[%s3234_s25 + $0x4] sm:$0xf]  ;;  %v1992_v14 = vld [vmem:[%s3234_s25 + $0x8] sm:$0xf]  ;;  %s3242_s24 = sphi %s4101_s24, %s1982_s24   ;;  %s3238_s26 = sphi %s4099_s26, %s4244_s26   ;;  %s3234_s25 = sphi %s4243_s25, %s2045_s25   ;;  %s3230_s15 = sphi %s4242_s15, %s2046_s15  }
 0x22c   : >> { %1989 = vst [vmem:[%s3230_s15] sm:$0xf] %v1988_v56  ;;  %1991 = vst [vmem:[%s3230_s15 + $0x4] sm:$0xf] %v1990_v45  ;;  %v1994_v15 = vld [vmem:[%s3234_s25 + $0xc] sm:$0xf]  ;;  %s2040_s27 = sadd.s32 1, %s3238_s26 }
 0x22d   : >> { %1993 = vst [vmem:[%s3230_s15 + $0x8] sm:$0xf] %v1992_v14  ;;  %v1996_v38 = vld [vmem:[%s3234_s25 + $0x10] sm:$0xf]  ;;  %v1998_v48 = vld [vmem:[%s3234_s25 + $0x14] sm:$0xf]  ;;  %p2041_p7 = scmp.ge.s32.totalorder %s2040_s27, %s4090_s20 }
 0x22e   : >> { %1995 = vst [vmem:[%s3230_s15 + $0xc] sm:$0xf] %v1994_v15  ;;  %1997 = vst [vmem:[%s3230_s15 + $0x10] sm:$0xf] %v1996_v38  ;;  %v2000_v4 = vld [vmem:[%s3234_s25 + $0x18] sm:$0xf] }
 0x22f   : >> { %1999 = vst [vmem:[%s3230_s15 + $0x14] sm:$0xf] %v1998_v48  ;;  %v2002_v29 = vld [vmem:[%s3234_s25 + $0x1c] sm:$0xf]  ;;  %v2004_v30 = vld [vmem:[%s3234_s25 + $0x20] sm:$0xf] }
 0x230   : >> { %2001 = vst [vmem:[%s3230_s15 + $0x18] sm:$0xf] %v2000_v4  ;;  %2003 = vst [vmem:[%s3230_s15 + $0x1c] sm:$0xf] %v2002_v29  ;;  %v2006_v17 = vld [vmem:[%s3234_s25 + $0x24] sm:$0xf] }
 0x231   : >> { %2005 = vst [vmem:[%s3230_s15 + $0x20] sm:$0xf] %v2004_v30  ;;  %v2008_v18 = vld [vmem:[%s3234_s25 + $0x28] sm:$0xf]  ;;  %v2010_v2 = vld [vmem:[%s3234_s25 + $0x2c] sm:$0xf] }
 0x232   : >> { %2007 = vst [vmem:[%s3230_s15 + $0x24] sm:$0xf] %v2006_v17  ;;  %2009 = vst [vmem:[%s3230_s15 + $0x28] sm:$0xf] %v2008_v18  ;;  %v2012_v3 = vld [vmem:[%s3234_s25 + $0x30] sm:$0xf] }
 0x233   : >> { %2011 = vst [vmem:[%s3230_s15 + $0x2c] sm:$0xf] %v2010_v2  ;;  %v2014_v7 = vld [vmem:[%s3234_s25 + $0x34] sm:$0xf]  ;;  %v2016_v1 = vld [vmem:[%s3234_s25 + $0x38] sm:$0xf] }
 0x234   : >> { %2013 = vst [vmem:[%s3230_s15 + $0x30] sm:$0xf] %v2012_v3  ;;  %2015 = vst [vmem:[%s3230_s15 + $0x34] sm:$0xf] %v2014_v7  ;;  %v2018_v5 = vld [vmem:[%s3234_s25 + $0x3c] sm:$0xf] }
 0x235   : >> { %2017 = vst [vmem:[%s3230_s15 + $0x38] sm:$0xf] %v2016_v1  ;;  %v2020_v49 = vld [vmem:[%s3234_s25 + $0x40] sm:$0xf]  ;;  %v2022_v50 = vld [vmem:[%s3234_s25 + $0x44] sm:$0xf] }
 0x236   : >> { %2019 = vst [vmem:[%s3230_s15 + $0x3c] sm:$0xf] %v2018_v5  ;;  %2021 = vst [vmem:[%s3230_s15 + $0x40] sm:$0xf] %v2020_v49  ;;  %v2024_v26 = vld [vmem:[%s3234_s25 + $0x48] sm:$0xf] }
 0x237   : >> { %2023 = vst [vmem:[%s3230_s15 + $0x44] sm:$0xf] %v2022_v50  ;;  %v2026_v31 = vld [vmem:[%s3234_s25 + $0x4c] sm:$0xf]  ;;  %v2028_v46 = vld [vmem:[%s3234_s25 + $0x50] sm:$0xf] }
 0x238   : >> { %2025 = vst [vmem:[%s3230_s15 + $0x48] sm:$0xf] %v2024_v26  ;;  %2027 = vst [vmem:[%s3230_s15 + $0x4c] sm:$0xf] %v2026_v31  ;;  %v2030_v28 = vld [vmem:[%s3234_s25 + $0x54] sm:$0xf] }
 0x239   : >> { %2029 = vst [vmem:[%s3230_s15 + $0x50] sm:$0xf] %v2028_v46  ;;  %v2032_v32 = vld [vmem:[%s3234_s25 + $0x58] sm:$0xf]  ;;  %v2034_v10 = vld [vmem:[%s3234_s25 + $0x5c] sm:$0xf] }
 0x23a   : >> { %2031 = vst [vmem:[%s3230_s15 + $0x54] sm:$0xf] %v2030_v28  ;;  %2033 = vst [vmem:[%s3230_s15 + $0x58] sm:$0xf] %v2032_v32  ;;  %v2036_v27 = vld [vmem:[%s3234_s25 + $0x60] sm:$0xf] }
 0x23b   : >> { %2035 = vst [vmem:[%s3230_s15 + $0x5c] sm:$0xf] %v2034_v10  ;;  %v2038_v37 = vld [vmem:[%s3234_s25 + $0x64] sm:$0xf]  ;;  %2037 = vst [vmem:[%s3230_s15 + $0x60] sm:$0xf] %v2036_v27 }
 0x23c   : >> { %2039 = vst [vmem:[%s3230_s15 + $0x64] sm:$0xf] %v2038_v37  ;;  %s4257_s27 = smov (%p2041_p7, %s2040_s27), 0  ;;  %s1982_s24 = sadd.s32 1, %s3242_s24  }
 0x23d   : >> { %s2043_s28 = smul.u32 104, %s4257_s27  ;;  %p1981_p8 = scmp.ge.s32.totalorder %s1982_s24, %s4090_s20 }
 0x23e   : >> { %s4244_s26 = smov %s4257_s27 }
 0x23f   : >> { %s2045_s25 = scalar_lea.vmem %s3930_s12, %s2043_s28 [#allocation3]   ;;  %s2046_s15 = scalar_lea.vmem %s4084_s22, %s2043_s28  }
 0x240   : > { %1984 = sbr.rel (!%p1981_p8) target bundleno = 555 (0x22b), region = 224 }
 0x245 PF: > { %3106 = sdivrem.u32 %s4255_s17, 26 }
 0x246   : > { %s2570_s29 = smul.u32 104, %s4090_s20 }
 0x248   : > { %s2051_s30 = scalar_lea.vmem %s3930_s12, %s2570_s29 [#allocation3]   ;;  %s2053_s14 = scalar_lea.vmem %s4084_s22, %s2570_s29  }
 0x24e   : > { %s3107_s4 = spop.drf %3106 }
 0x24f   : > { %p2572_p9 = scmp.le.s32.totalorder %s3107_s4, 0 }
 0x250   : > { %s3244_s5 = smov (!%p2572_p9), %s2053_s14   ;;  %s3248_s6 = smov (!%p2572_p9), %s2051_s30  }
 0x251   : > { %2307 = sbr.rel (%p2572_p9) target bundleno = 606 (0x25e), region = 229  ;;  %s3252_s7 = smov (!%p2572_p9), 0  }
 0x252   : > { %s3256_s8 = smov (!%p2572_p9), 0  }
 0x256 LB: >> { %v2063_v19 = vld [vmem:[%s3250_s6] sm:$0xf]  ;;  %s2065_s9 = sadd.s32 1, %s3254_s7  ;;  %s2057_s8 = sadd.s32 1, %s3258_s8   ;;  %s3258_s8 = sphi %s3256_s8, %s2057_s8   ;;  %s3254_s7 = sphi %s3252_s7, %s3253_s7   ;;  %s3250_s6 = sphi %s3248_s6, %s2070_s6   ;;  %s3246_s5 = sphi %s3244_s5, %s2071_s5  }
 0x257   : >> { %2064 = vst [vmem:[%s3246_s5] sm:$0xf] %v2063_v19  ;;  %p2066_p10 = scmp.ge.s32.totalorder %s2065_s9, %s3107_s4  ;;  %p2056_p11 = scmp.ge.s32.totalorder %s2057_s8, %s3107_s4 }
 0x259   : >> { %s4259_s9 = smov (%p2066_p10, %s2065_s9), 0  ;;  %2059 = sbr.rel (!%p2056_p11) target bundleno = 598 (0x256), region = 235 }
 0x25a   : >> { %s2573_s12 = sshll.u32 %s4259_s9, 2  ;;  %s3253_s7 = smov %s4259_s9  }
 0x25b   : >> { %s2070_s6 = scalar_lea.vmem %s2051_s30, %s2573_s12 [#allocation3]   ;;  %s2071_s5 = scalar_lea.vmem %s2053_s14, %s2573_s12  }
 0x25e PF: > { %p10_p12 = scmp.ge.s32.totalorder %s3302_s16, 4   ;;  %s4245_s12 = smov %s3190_s13 }
 0x25f   : > { %s4246_s13 = smov %s3312_s19  ;;  %s4247_s14 = smov %s3302_s16 }
 0x260   :  { %12 = sbr.rel (!%p10_p12) target bundleno = 2 (0x2), region = 246 }

// kernel: dropnet_forward.4
= control target key start
LH: loop header
LB: loop body
LE: loop exit
PB: predicated region body
PF: predicated region fallthrough
CT: control target
= control target key end

     0   :  { %s1546_s12 = smov 0   ;;  %s1548_s13 = smov 0   ;;  %s1911_s0 = inlined_call_operand.vmem [shape: bf16[4,50,150], index: 0, kind: input, shape index: {}]   ;;  %s1912_s1 = inlined_call_operand.vmem [shape: bf16[150,16], index: 1, kind: input, shape index: {}]   ;;  %s1913_s2 = inlined_call_operand.vmem [shape: f32[1,16], index: 2, kind: input, shape index: {}]   ;;  %s1914_s3 = inlined_call_operand.vmem [shape: bf16[50,16], index: 3, kind: output, shape index: {}]  }
   0x1   :  { %s1550_s14 = smov 0  }
   0x2 LB: > { %s1562_s15 = sadd.s32 4294967295, %s1459_s14   ;;  %s1565_s16 = sadd.s32 1, %s1459_s14   ;;  %s1459_s14 = sphi %s1550_s14, %s1926_s14   ;;  %s1455_s13 = sphi %s1548_s13, %s1925_s13   ;;  %s1451_s12 = sphi %s1546_s12, %s1924_s12  }
   0x3   : > { %s17_s17 = ssub.s32 %s1459_s14, %s1565_s16  ;;  %s20_s18 = sadd.s32 1, %s1455_s13 }
   0x4   : > { %p18_p0 = scmp.eq.s32.totalorder %s17_s17, 0  ;;  %p27_p1 = scmp.ne.s32.totalorder %s1455_s13, %s1451_s12 }
   0x5   : > { %p28_p2 = scmp.eq.s32.totalorder %s1459_s14, 0  ;;  %p99_p3 = scmp.eq.s32.totalorder %s1562_s15, 1 }
   0x6   : > { %s1575_s19 = scalar_select %p18_p0, %s1455_s13, %s20_s18  }
   0x7   : > { %p29_p4 = por %p28_p2, %p27_p1  ;;  %p1577_p5 = por %p99_p3, %p27_p1 }
   0x8   : > { %p1085_p6 = scmp.ge.s32.totalorder %s1459_s14, 2 }
   0xa   : > { %127 = sbr.rel (%p1085_p6) target bundleno = 61 (0x3d), region = 24 }
   0xf   : > { %130 = sbr.rel (!%p29_p4) target bundleno = 61 (0x3d), region = 28  ;;  %s132_s21 = sand.u32 (%p29_p4), 1, %s1455_s13  }
  0x10   : > { %s1087_s22 = sshll.u32 (%p29_p4), %s1459_s14, 2  ;;  %s1086_s23 = sshll.u32 (%p29_p4), %s132_s21, 7 }
  0x11   : > { %s136_s24 = ssub.s32 (%p29_p4), 7, %s1087_s22  ;;  %s1176_s25 = sshll.u32 (%p29_p4), %s1459_s14, 5 }
  0x12   : > { %p137_p7 = scmp.lt.s32.totalorder (%p29_p4), %s136_s24, 4  ;;  %s1590_s28 = scalar_lea.vmem (%p29_p4), %s1911_s0, %s1176_s25  }
  0x13   : > { %s1593_s30 = scalar_lea.vmem (%p29_p4), [#allocation2], %s1086_s23  }
  0x14   : > { %s1928_s24 = smov (!%p137_p7, %s136_s24), 4 }
  0x15   : > { %s1174_s29 = sshll.u32 %s1928_s24, 9 }
  0x16   : > { %p1093_p8 = scmp.eq.s32.totalorder %s1174_s29, 0 }
  0x17   : > { %s1596_s4 = sshrl.u32 (!%p1093_p8), %s1928_s24, 2 }
  0x18   : > { %147 = sbr.rel (%p1093_p8) target bundleno = 61 (0x3d), region = 32  ;;  %p1094_p9 = scmp.le.s32.totalorder (!%p1093_p8), %s1596_s4, 0 }
  0x1d   : > { %1011 = sbr.rel (%p1094_p9) target bundleno = 44 (0x2c), region = 180  ;;  %s1916_s5 = smov (!%p1094_p9), %s1593_s30 }
  0x1e   : > { %s1917_s6 = smov (!%p1094_p9), %s1590_s28  ;;  %s1605_s7 = smov (!%p1094_p9), 0  }
  0x1f   : > { %s1607_s8 = smov (!%p1094_p9), 0  }
  0x22 LB: >> { %v246_v0 = vld [vmem:[%s1467_s6] sm:$0xff]  ;;  %v248_v1 = vld [vmem:[%s1467_s6 + $0x8] sm:$0xff]  ;;  %v250_v2 = vld [vmem:[%s1467_s6 + $0x10] sm:$0xff]  ;;  %s278_s9 = sadd.s32 1, %s1471_s7  ;;  %s240_s8 = sadd.s32 1, %s1475_s8   ;;  %s1475_s8 = sphi %s1607_s8, %s240_s8   ;;  %s1471_s7 = sphi %s1605_s7, %s1918_s7   ;;  %s1467_s6 = sphi %s1917_s6, %s283_s6   ;;  %s1463_s5 = sphi %s1916_s5, %s284_s5  }
  0x23   : >> { %247 = vst [vmem:[%s1463_s5] sm:$0xff] %v246_v0  ;;  %249 = vst [vmem:[%s1463_s5 + $0x8] sm:$0xff] %v248_v1  ;;  %v252_v3 = vld [vmem:[%s1467_s6 + $0x18] sm:$0xff]  ;;  %v256_v5 = vld [vmem:[%s1467_s6 + $0x40] sm:$0xff]  ;;  %p279_p10 = scmp.ge.s32.totalorder %s278_s9, %s1596_s4  ;;  %p239_p11 = scmp.ge.s32.totalorder %s240_s8, %s1596_s4 }
  0x24   : >> { %251 = vst [vmem:[%s1463_s5 + $0x10] sm:$0xff] %v250_v2  ;;  %v254_v4 = vld [vmem:[%s1467_s6 + $0x38] sm:$0xff]  ;;  %253 = vst [vmem:[%s1463_s5 + $0x18] sm:$0xff] %v252_v3  ;;  %v258_v6 = vld [vmem:[%s1467_s6 + $0x48] sm:$0xff] }
  0x25   : >> { %255 = vst [vmem:[%s1463_s5 + $0x20] sm:$0xff] %v254_v4  ;;  %257 = vst [vmem:[%s1463_s5 + $0x28] sm:$0xff] %v256_v5  ;;  %v260_v7 = vld [vmem:[%s1467_s6 + $0x50] sm:$0xff]  ;;  %v264_v9 = vld [vmem:[%s1467_s6 + $0x78] sm:$0xff]  ;;  %s1930_s9 = smov (%p279_p10, %s278_s9), 0 }
  0x26   : >> { %v262_v8 = vld [vmem:[%s1467_s6 + $0x70] sm:$0xff]  ;;  %259 = vst [vmem:[%s1463_s5 + $0x30] sm:$0xff] %v258_v6  ;;  %261 = vst [vmem:[%s1463_s5 + $0x38] sm:$0xff] %v260_v7  ;;  %v266_v10 = vld [vmem:[%s1467_s6 + $0x80] sm:$0xff]  ;;  %s1095_s10 = sshll.u32 %s1930_s9, 5  ;;  %s1918_s7 = smov %s1930_s9 }
  0x27   : >> { %263 = vst [vmem:[%s1463_s5 + $0x40] sm:$0xff] %v262_v8  ;;  %v268_v11 = vld [vmem:[%s1467_s6 + $0x88] sm:$0xff]  ;;  %265 = vst [vmem:[%s1463_s5 + $0x48] sm:$0xff] %v264_v9  ;;  %v272_v13 = vld [vmem:[%s1467_s6 + $0xb0] sm:$0xff]  ;;  %242 = sbr.rel (!%p239_p11) target bundleno = 34 (0x22), region = 186 }
  0x28   : >> { %267 = vst [vmem:[%s1463_s5 + $0x50] sm:$0xff] %v266_v10  ;;  %269 = vst [vmem:[%s1463_s5 + $0x58] sm:$0xff] %v268_v11  ;;  %v270_v12 = vld [vmem:[%s1467_s6 + $0xa8] sm:$0xff]  ;;  %v274_v14 = vld [vmem:[%s1467_s6 + $0xb8] sm:$0xff] }
  0x29   : >> { %271 = vst [vmem:[%s1463_s5 + $0x60] sm:$0xff] %v270_v12  ;;  %273 = vst [vmem:[%s1463_s5 + $0x68] sm:$0xff] %v272_v13  ;;  %v276_v15 = vld [vmem:[%s1467_s6 + $0xc0] sm:$0xff]  ;;  %s283_s6 = scalar_lea.vmem %s1590_s28, %s1095_s10  }
  0x2a   : >> { %275 = vst [vmem:[%s1463_s5 + $0x70] sm:$0xff] %v274_v14  ;;  %277 = vst [vmem:[%s1463_s5 + $0x78] sm:$0xff] %v276_v15  ;;  %s284_s5 = scalar_lea.vmem %s1593_s30, %s1095_s10 [#allocation2]  }
  0x2c PF: > { %s1665_s11 = sand.u32 3, %s1928_s24   ;;  %s1177_s17 = sshll.u32 %s1596_s4, 5 }
  0x2d   : > { %s1669_s18 = scalar_lea.vmem %s1590_s28, %s1177_s17   ;;  %s1672_s21 = scalar_lea.vmem %s1593_s30, %s1177_s17 [#allocation2]  }
  0x2e   : > { %p1100_p12 = scmp.le.s32.totalorder %s1665_s11, 0 }
  0x2f   : > { %s1919_s22 = smov (!%p1100_p12), %s1672_s21  ;;  %s1920_s23 = smov (!%p1100_p12), %s1669_s18 }
  0x30   : > { %1025 = sbr.rel (%p1100_p12) target bundleno = 61 (0x3d), region = 191  ;;  %s1485_s25 = smov (!%p1100_p12), 0  }
  0x31   : > { %s1489_s26 = smov (!%p1100_p12), 0  }
  0x35 LB: >> { %v301_v16 = vld [vmem:[%s1483_s23] sm:$0xff]  ;;  %v303_v17 = vld [vmem:[%s1483_s23 + $0x38] sm:$0xff]  ;;  %v305_v18 = vld [vmem:[%s1483_s23 + $0x70] sm:$0xff]  ;;  %s309_s24 = sadd.s32 1, %s1487_s25  ;;  %s295_s26 = sadd.s32 1, %s1491_s26   ;;  %s1491_s26 = sphi %s1489_s26, %s295_s26   ;;  %s1487_s25 = sphi %s1485_s25, %s1486_s25   ;;  %s1483_s23 = sphi %s1920_s23, %s314_s23   ;;  %s1479_s22 = sphi %s1919_s22, %s315_s22  }
  0x36   : >> { %302 = vst [vmem:[%s1479_s22] sm:$0xff] %v301_v16  ;;  %304 = vst [vmem:[%s1479_s22 + $0x20] sm:$0xff] %v303_v17  ;;  %v307_v19 = vld [vmem:[%s1483_s23 + $0xa8] sm:$0xff]  ;;  %p310_p13 = scmp.ge.s32.totalorder %s309_s24, %s1665_s11  ;;  %p294_p0 = scmp.ge.s32.totalorder %s295_s26, %s1665_s11 }
  0x37   : >> { %306 = vst [vmem:[%s1479_s22 + $0x40] sm:$0xff] %v305_v18  ;;  %308 = vst [vmem:[%s1479_s22 + $0x60] sm:$0xff] %v307_v19 }
  0x38   : >> { %s1932_s24 = smov (%p310_p13, %s309_s24), 0  ;;  %297 = sbr.rel (!%p294_p0) target bundleno = 53 (0x35), region = 197 }
  0x39   : >> { %s1101_s27 = sshll.u32 %s1932_s24, 3  ;;  %s1486_s25 = smov %s1932_s24  }
  0x3a   : >> { %s314_s23 = scalar_lea.vmem %s1669_s18, %s1101_s27   ;;  %s315_s22 = scalar_lea.vmem %s1672_s21, %s1101_s27 [#allocation2]  }
  0x3d PF: > { %p1103_p1 = scmp.ge.s32.totalorder %s1459_s14, 1  ;;  %p320_p2 = scmp.lt.s32.totalorder %s1459_s14, 3 }
  0x3f   : > { %p321_p3 = pnand %p1103_p1, %p320_p2 }
  0x40   : > { %s327_s4 = sand.u32 (!%p321_p3), 1, %s1451_s12  }
  0x41   : > { %324 = sbr.rel (%p321_p3) target bundleno = 410 (0x19a), region = 80  ;;  %s1104_s5 = sshll.u32 (!%p321_p3), %s327_s4, 7 }
  0x42   : > { %s1721_s8 = scalar_lea.vmem (!%p321_p3), [#allocation2], %s1104_s5  ;;  %s1105_s5 = sshll.u32 (!%p321_p3), %s327_s4, 4 }
  0x43   : > { %s1845_s6 = scalar_lea.vmem (!%p321_p3), [#allocation3], %s1105_s5  }
  0x46   : > { %v1696_v20 = vld [vmem:[%s1912_s1 + $0x38] sm:$0xff]   ;;  %v1525_v21 = vmov 0   ;;  %v1705_v22 = vld [vmem:[%s1912_s1 + $0x30] sm:$0xff]   ;;  %v1717_v23 = vld [vmem:[%s1912_s1 + $0x28] sm:$0xff]   ;;  %vm459_vm0 = vcmask 179200   ;;  %vm466_vm1 = vcmask 1042432  }
  0x47   : > { %470 = vmatprep.subr.bf16.mxu0 %v1525_v21  ;;  %548 = vmatprep.subr.bf16.mxu1 %v1525_v21  ;;  %v1728_v24 = vld [vmem:[%s1912_s1 + $0x20] sm:$0xff]   ;;  %v1740_v27 = vld [vmem:[%s1912_s1 + $0x18] sm:$0xff]   ;;  %v1750_v28 = vld [vmem:[%s1912_s1 + $0x10] sm:$0xff]   ;;  %vm796_vm2 = vcmask 125952   ;;  %s1158_s12 = sshll.u32 (%p1577_p5), %s1562_s15, 2  ;;  %s1183_s4 = sshll.u32 (%p1577_p5), %s1562_s15, 4 }
  0x48   : > { %471 = vmatpush1.bf16.msra.mxu0 %v1696_v20  ;;  %549 = vmatpush1.bf16.msra.mxu1 %v1696_v20  ;;  %v1351_v25 = vld [vmem:[%s1721_s8 + $0x4] ss:$8 sps:$4 sm:$0xff]   ;;  %v1347_v31 = vld [vmem:[%s1912_s1 + $0x48] ss:$0 sps:$4 sm:$0x77]   ;;  %s809_s7 = ssub.s32 (%p1577_p5), 7, %s1158_s12  ;;  %s1862_s10 = scalar_lea.vmem (%p1577_p5), %s1914_s3, %s1183_s4  }
  0x49   : > { %472 = vmatprep.subr.bf16.mxu0 %v1525_v21  ;;  %550 = vmatprep.subr.bf16.mxu1 %v1525_v21  ;;  %v1354_v26 = vld [vmem:[%s1721_s8 + $0x24] ss:$8 sps:$4 sm:$0xff]   ;;  %v468_v32 = vsel %vm466_vm1, %v1347_v31, 0  ;;  %v1349_v34 = vld [vmem:[%s1721_s8] ss:$8 sps:$4 sm:$0xff]   ;;  %p810_p4 = scmp.lt.s32.totalorder (%p1577_p5), %s809_s7, 4 }
  0x4a   : > { %1120 = vmatprep.mubr.msk.bf16.mxu0 %vm459_vm0, %v1351_v25  ;;  %1130 = vmatprep.mubr.msk.bf16.mxu1 %vm459_vm0, %v1354_v26  ;;  %v1759_v29 = vld [vmem:[%s1912_s1 + $0x8] sm:$0xff]   ;;  %v1768_v30 = vld [vmem:[%s1912_s1] sm:$0xff]   ;;  %v1355_v36 = vld [vmem:[%s1721_s8 + $0x14] ss:$8 sps:$4 sm:$0xff]  }
  0x4b   : > { %v1348_v33 = vld [vmem:[%s1912_s1 + $0x40] sm:$0xff]   ;;  %v1358_v37 = vld [vmem:[%s1721_s8 + $0x34] ss:$8 sps:$4 sm:$0xff]   ;;  %v1357_v38 = vld [vmem:[%s1721_s8 + $0x10] ss:$8 sps:$4 sm:$0xff]  }
  0x4c   : > { %473 = vmatpush1.bf16.msra.mxu0 %v1705_v22  ;;  %551 = vmatpush1.bf16.msra.mxu1 %v1705_v22  ;;  %v1352_v35 = vld [vmem:[%s1721_s8 + $0x20] ss:$8 sps:$4 sm:$0xff]   ;;  %v1360_v39 = vld [vmem:[%s1721_s8 + $0x30] ss:$8 sps:$4 sm:$0xff]   ;;  %v1363_v40 = vld [vmem:[%s1721_s8 + $0x44] ss:$8 sps:$4 sm:$0xff]  }
  0x4d   : > { %474 = vmatprep.subr.bf16.mxu0 %v1525_v21  ;;  %552 = vmatprep.subr.bf16.mxu1 %v1525_v21  ;;  %v1366_v41 = vld [vmem:[%s1721_s8 + $0x64] ss:$8 sps:$4 sm:$0xff]   ;;  %v1361_v42 = vld [vmem:[%s1721_s8 + $0x40] ss:$8 sps:$4 sm:$0xff]   ;;  %v1367_v44 = vld [vmem:[%s1721_s8 + $0x54] ss:$8 sps:$4 sm:$0xff]  }
  0x4e   : > { %v1364_v43 = vld [vmem:[%s1721_s8 + $0x60] ss:$8 sps:$4 sm:$0xff]   ;;  %v1369_v45 = vld [vmem:[%s1721_s8 + $0x74] ss:$8 sps:$4 sm:$0xff]   ;;  %v1371_v46 = vld [vmem:[%s1721_s8 + $0x50] ss:$8 sps:$4 sm:$0xff]  }
  0x4f   : > { %v1372_v47 = vld [vmem:[%s1721_s8 + $0x70] ss:$8 sps:$4 sm:$0xff]   ;;  %v1152_v4 = vld [vmem:[%s1913_s2] ss:$0 sm:$0xff] }
  0x50   : > { %475 = vmatpush1.bf16.msra.mxu0 %v1717_v23  ;;  %553 = vmatpush1.bf16.msra.mxu1 %v1717_v23 }
  0x51   : > { %476 = vmatprep.subr.bf16.mxu0 %v1525_v21  ;;  %554 = vmatprep.subr.bf16.mxu1 %v1525_v21 }
  0x54   : > { %477 = vmatpush1.bf16.msra.mxu0 %v1728_v24  ;;  %555 = vmatpush1.bf16.msra.mxu1 %v1728_v24 }
  0x55   : > { %478 = vmatprep.subr.bf16.mxu0 %v1525_v21  ;;  %556 = vmatprep.subr.bf16.mxu1 %v1525_v21 }
  0x58   : > { %479 = vmatpush1.bf16.msra.mxu0 %v1740_v27  ;;  %557 = vmatpush1.bf16.msra.mxu1 %v1740_v27 }
  0x59   : > { %480 = vmatprep.subr.bf16.mxu0 %v1525_v21  ;;  %558 = vmatprep.subr.bf16.mxu1 %v1525_v21 }
  0x5c   : > { %481 = vmatpush1.bf16.msra.mxu0 %v1750_v28  ;;  %559 = vmatpush1.bf16.msra.mxu1 %v1750_v28 }
  0x5d   : > { %482 = vmatprep.subr.bf16.mxu0 %v1525_v21  ;;  %560 = vmatprep.subr.bf16.mxu1 %v1525_v21 }
  0x60   : > { %483 = vmatpush1.bf16.msra.mxu0 %v1759_v29  ;;  %561 = vmatpush1.bf16.msra.mxu1 %v1759_v29 }
  0x61   : > { %484 = vmatprep.subr.bf16.mxu0 %v1525_v21  ;;  %562 = vmatprep.subr.bf16.mxu1 %v1525_v21 }
  0x64   : > { %485 = vmatpush1.bf16.msra.mxu0 %v1768_v30  ;;  %563 = vmatpush1.bf16.msra.mxu1 %v1768_v30 }
  0x65   : > { %498 = vmatprep.subr.bf16.mxu0 %v1525_v21  ;;  %576 = vmatprep.subr.bf16.mxu1 %v1525_v21 }
  0x68   : > { %499 = vmatpush2.bf16.msra.mxu0 %v468_v32  ;;  %577 = vmatpush2.bf16.msra.mxu1 %v468_v32 }
  0x69   : > { %500 = vmatprep.subr.bf16.mxu0 %v1525_v21  ;;  %578 = vmatprep.subr.bf16.mxu1 %v1525_v21 }
  0x6c   : > { %501 = vmatpush2.bf16.msra.mxu0 %v1348_v33  ;;  %579 = vmatpush2.bf16.msra.mxu1 %v1348_v33 }
  0x6d   : > { %630 = vmatprep.subr.bf16.mxu0 %v1525_v21  ;;  %712 = vmatprep.subr.bf16.mxu1 %v1525_v21 }
  0x6f   : > { %503 = vmatmul.mubr.bf16.vlgmr.msra.gmra.mxu0 %v1349_v34  ;;  %581 = vmatmul.mubr.bf16.vlgmr.msra.gmra.mxu1 %v1352_v35 }
  0x70   : > { %631 = vmatpush1.bf16.msra.mxu0 %v1696_v20  ;;  %713 = vmatpush1.bf16.msra.mxu1 %v1696_v20 }
  0x71   : > { %632 = vmatprep.subr.bf16.mxu0 %v1525_v21  ;;  %714 = vmatprep.subr.bf16.mxu1 %v1525_v21 }
  0x72   : > { %1121 = vmatprep.mubr.msk.bf16.mxu0 %vm459_vm0, %v1355_v36  ;;  %1131 = vmatprep.mubr.msk.bf16.mxu1 %vm459_vm0, %v1358_v37 }
  0x74   : > { %633 = vmatpush1.bf16.msra.mxu0 %v1705_v22  ;;  %715 = vmatpush1.bf16.msra.mxu1 %v1705_v22 }
  0x75   : > { %634 = vmatprep.subr.bf16.mxu0 %v1525_v21  ;;  %716 = vmatprep.subr.bf16.mxu1 %v1525_v21 }
  0x77   : > { %511 = vmatmul.mubr.bf16.gmra.mxu0 %v1357_v38  ;;  %589 = vmatmul.mubr.bf16.gmra.mxu1 %v1360_v39 }
  0x78   : > { %635 = vmatpush1.bf16.msra.mxu0 %v1717_v23  ;;  %717 = vmatpush1.bf16.msra.mxu1 %v1717_v23 }
  0x79   : > { %636 = vmatprep.subr.bf16.mxu0 %v1525_v21  ;;  %718 = vmatprep.subr.bf16.mxu1 %v1525_v21 }
  0x7a   : > { %1140 = vmatprep.mubr.msk.bf16.mxu0 %vm459_vm0, %v1363_v40  ;;  %1150 = vmatprep.mubr.msk.bf16.mxu1 %vm459_vm0, %v1366_v41 }
  0x7c   : > { %637 = vmatpush1.bf16.msra.mxu0 %v1728_v24  ;;  %719 = vmatpush1.bf16.msra.mxu1 %v1728_v24 }
  0x7d   : > { %638 = vmatprep.subr.bf16.mxu0 %v1525_v21  ;;  %720 = vmatprep.subr.bf16.mxu1 %v1525_v21 }
  0x80   : > { %639 = vmatpush1.bf16.msra.mxu0 %v1740_v27  ;;  %721 = vmatpush1.bf16.msra.mxu1 %v1740_v27 }
  0x81   : > { %640 = vmatprep.subr.bf16.mxu0 %v1525_v21  ;;  %722 = vmatprep.subr.bf16.mxu1 %v1525_v21 }
  0x84   : > { %641 = vmatpush1.bf16.msra.mxu0 %v1750_v28  ;;  %723 = vmatpush1.bf16.msra.mxu1 %v1750_v28 }
  0x85   : > { %642 = vmatprep.subr.bf16.mxu0 %v1525_v21  ;;  %724 = vmatprep.subr.bf16.mxu1 %v1525_v21 }
  0x88   : > { %643 = vmatpush1.bf16.msra.mxu0 %v1759_v29  ;;  %725 = vmatpush1.bf16.msra.mxu1 %v1759_v29 }
  0x89   : > { %644 = vmatprep.subr.bf16.mxu0 %v1525_v21  ;;  %726 = vmatprep.subr.bf16.mxu1 %v1525_v21 }
  0x8c   : > { %645 = vmatpush1.bf16.msra.mxu0 %v1768_v30  ;;  %727 = vmatpush1.bf16.msra.mxu1 %v1768_v30 }
  0x8d   : > { %658 = vmatprep.subr.bf16.mxu0 %v1525_v21  ;;  %740 = vmatprep.subr.bf16.mxu1 %v1525_v21 }
  0x90   : > { %659 = vmatpush2.bf16.msra.mxu0 %v468_v32  ;;  %741 = vmatpush2.bf16.msra.mxu1 %v468_v32 }
  0x91   : > { %660 = vmatprep.subr.bf16.mxu0 %v1525_v21  ;;  %742 = vmatprep.subr.bf16.mxu1 %v1525_v21 }
  0x94   : > { %661 = vmatpush2.bf16.msra.mxu0 %v1348_v33  ;;  %743 = vmatpush2.bf16.msra.mxu1 %v1348_v33 }
  0x97   : > { %663 = vmatmul.mubr.bf16.vlgmr.msra.gmra.mxu0 %v1361_v42  ;;  %745 = vmatmul.mubr.bf16.vlgmr.msra.gmra.mxu1 %v1364_v43 }
  0x98   : > { %1141 = vmatprep.mubr.msk.bf16.mxu0 %vm459_vm0, %v1367_v44  ;;  %1151 = vmatprep.mubr.msk.bf16.mxu1 %vm459_vm0, %v1369_v45 }
  0x9f   : > { %671 = vmatmul.mubr.bf16.gmra.mxu0 %v1371_v46  ;;  %753 = vmatmul.mubr.bf16.gmra.mxu1 %v1372_v47 }
 0x12f   : > { %v504_v48 = vpop.f32.mrf.mxu0  ;;  %v582_v49 = vpop.f32.mrf.mxu1 }
 0x130   : > { %v597_v0 = vmax.f32 %v504_v48, %v582_v49 }
 0x131   : > { %v506_v50 = vpop.f32.mrf.mxu0  ;;  %v584_v51 = vpop.f32.mrf.mxu1 }
 0x133   : > { %v507_v52 = vpop.f32.mrf.mxu0  ;;  %v585_v53 = vpop.f32.mrf.mxu1 }
 0x134   : > { %v598_v7 = vmax.f32 %v507_v52, %v585_v53 }
 0x135   : > { %v509_v54 = vpop.f32.mrf.mxu0  ;;  %v587_v55 = vpop.f32.mrf.mxu1 }
 0x137   : > { %v512_v56 = vpop.f32.mrf.mxu0  ;;  %v590_v57 = vpop.f32.mrf.mxu1 }
 0x138   : > { %v599_v15 = vmax.f32 %v512_v56, %v590_v57 }
 0x139   : > { %v514_v58 = vpop.f32.mrf.mxu0  ;;  %v592_v59 = vpop.f32.mrf.mxu1 }
 0x13b   : > { %v515_v60 = vpop.f32.mrf.mxu0  ;;  %v593_v61 = vpop.f32.mrf.mxu1 }
 0x13c   : > { %v600_v25 = vmax.f32 %v515_v60, %v593_v61 }
 0x13d   : > { %v517_v62 = vpop.f32.mrf.mxu0  ;;  %v595_v63 = vpop.f32.mrf.mxu1 }
 0x157   : > { %v664_v1 = vpop.f32.mrf.mxu0  ;;  %v746_v2 = vpop.f32.mrf.mxu1 }
 0x158   : > { %v679_v3 = vmax.f32 %v597_v0, %v664_v1 }
 0x159   : > { %v666_v5 = vpop.f32.mrf.mxu0  ;;  %v748_v6 = vpop.f32.mrf.mxu1 }
 0x15a   : > { %v761_v8 = vmax.f32 %v679_v3, %v746_v2 }
 0x15b   : > { %v667_v9 = vpop.f32.mrf.mxu0  ;;  %v749_v10 = vpop.f32.mrf.mxu1 }
 0x15c   : > { %v772_v11 = vadd.f32 %v1152_v4, %v761_v8  ;;  %v680_v12 = vmax.f32 %v598_v7, %v667_v9 }
 0x15d   : > { %v669_v13 = vpop.f32.mrf.mxu0  ;;  %v751_v14 = vpop.f32.mrf.mxu1 }
 0x15e   : > { %v776_v16 = vmax.f32 %v772_v11, 0.0  ;;  %v762_v17 = vmax.f32 %v680_v12, %v749_v10 }
 0x15f   : > { %v672_v18 = vpop.f32.mrf.mxu0  ;;  %v754_v19 = vpop.f32.mrf.mxu1 }
 0x160   : > { %v1179_v20 = vpack.c.bf16 %v776_v16, %v776_v16  ;;  %v773_v21 = vadd.f32 %v1152_v4, %v762_v17  ;;  %v681_v22 = vmax.f32 %v599_v15, %v672_v18 }
 0x161   : > { %v674_v23 = vpop.f32.mrf.mxu0  ;;  %v756_v24 = vpop.f32.mrf.mxu1 }
 0x162   : > { %797 = vst.msk [vmem:[%s1845_s6] sm:$0xf] %vm796_vm2, %v1179_v20  ;;  %v777_v26 = vmax.f32 %v773_v21, 0.0  ;;  %v763_v27 = vmax.f32 %v681_v22, %v754_v19 }
 0x163   : > { %v675_v28 = vpop.f32.mrf.mxu0  ;;  %v757_v29 = vpop.f32.mrf.mxu1 }
 0x164   : > { %v1180_v30 = vpack.c.bf16 %v777_v26, %v777_v26  ;;  %v774_v31 = vadd.f32 %v1152_v4, %v763_v27  ;;  %v682_v32 = vmax.f32 %v600_v25, %v675_v28 }
 0x165   : > { %v677_v33 = vpop.f32.mrf.mxu0  ;;  %v759_v34 = vpop.f32.mrf.mxu1 }
 0x166   : > { %798 = vst.msk [vmem:[%s1845_s6 + $0x4] sm:$0xf] %vm796_vm2, %v1180_v30  ;;  %v778_v35 = vmax.f32 %v774_v31, 0.0  ;;  %v764_v36 = vmax.f32 %v682_v32, %v757_v29 }
 0x168   : > { %v1181_v37 = vpack.c.bf16 %v778_v35, %v778_v35  ;;  %v775_v38 = vadd.f32 %v1152_v4, %v764_v36 }
 0x16a   : > { %799 = vst.msk [vmem:[%s1845_s6 + $0x8] sm:$0xf] %vm796_vm2, %v1181_v37  ;;  %v779_v39 = vmax.f32 %v775_v38, 0.0  ;;  %807 = sbr.rel (!%p1577_p5) target bundleno = 410 (0x19a), region = 88 }
 0x16c   : > { %v1182_v40 = vpack.c.bf16 %v779_v39, %v779_v39 }
 0x16e   : > { %800 = vst.msk [vmem:[%s1845_s6 + $0xc] sm:$0xf] %vm796_vm2, %v1182_v40 }
 0x16f   : > { %s1934_s7 = smov (!%p810_p4, %s809_s7), 4 }
 0x170   : > { %s1159_s11 = sshll.u32 %s1934_s7, 6 }
 0x171   : > { %p1162_p6 = scmp.eq.s32.totalorder %s1159_s11, 0 }
 0x172   : > { %s1868_s20 = sshrl.u32 (!%p1162_p6), %s1934_s7, 2 }
 0x173   : > { %818 = sbr.rel (%p1162_p6) target bundleno = 410 (0x19a), region = 92  ;;  %p1163_p5 = scmp.le.s32.totalorder (!%p1162_p6), %s1868_s20, 0 }
 0x178   : > { %1039 = sbr.rel (%p1163_p5) target bundleno = 393 (0x189), region = 202  ;;  %s1921_s15 = smov (!%p1163_p5), %s1862_s10 }
 0x179   : > { %s1922_s17 = smov (!%p1163_p5), %s1845_s6  ;;  %s1877_s18 = smov (!%p1163_p5), 0  }
 0x17a   : > { %s1505_s21 = smov (!%p1163_p5), 0  }
 0x17d LB: >> { %v835_v41 = vld [vmem:[%s1499_s17] sm:$0xf]  ;;  %v837_v42 = vld [vmem:[%s1499_s17 + $0x4] sm:$0xf]  ;;  %v839_v43 = vld [vmem:[%s1499_s17 + $0x8] sm:$0xf]  ;;  %s1507_s21 = sphi %s1505_s21, %s829_s21   ;;  %s1503_s18 = sphi %s1877_s18, %s1923_s18   ;;  %s1499_s17 = sphi %s1922_s17, %s848_s17   ;;  %s1495_s15 = sphi %s1921_s15, %s849_s15  }
 0x17e   : >> { %836 = vst [vmem:[%s1495_s15] sm:$0xf] %v835_v41  ;;  %838 = vst [vmem:[%s1495_s15 + $0x4] sm:$0xf] %v837_v42  ;;  %v841_v44 = vld [vmem:[%s1499_s17 + $0xc] sm:$0xf]  ;;  %s843_s22 = sadd.s32 1, %s1503_s18 }
 0x17f   : >> { %840 = vst [vmem:[%s1495_s15 + $0x8] sm:$0xf] %v839_v43  ;;  %842 = vst [vmem:[%s1495_s15 + $0xc] sm:$0xf] %v841_v44  ;;  %p844_p7 = scmp.ge.s32.totalorder %s843_s22, %s1868_s20  ;;  %s829_s21 = sadd.s32 1, %s1507_s21  }
 0x180   : >> { %p828_p8 = scmp.ge.s32.totalorder %s829_s21, %s1868_s20 }
 0x181   : >> { %s1936_s22 = smov (%p844_p7, %s843_s22), 0 }
 0x182   : >> { %s1164_s23 = sshll.u32 %s1936_s22, 4  ;;  %s1923_s18 = smov %s1936_s22 }
 0x183   : >> { %s848_s17 = scalar_lea.vmem %s1845_s6, %s1164_s23 [#allocation3]   ;;  %s849_s15 = scalar_lea.vmem %s1862_s10, %s1164_s23  }
 0x184   : > { %831 = sbr.rel (!%p828_p8) target bundleno = 381 (0x17d), region = 208 }
 0x189 PF: > { %s1893_s25 = sand.u32 3, %s1934_s7   ;;  %s1184_s26 = sshll.u32 %s1868_s20, 4 }
 0x18a   : > { %s854_s24 = scalar_lea.vmem %s1845_s6, %s1184_s26 [#allocation3]   ;;  %s856_s27 = scalar_lea.vmem %s1862_s10, %s1184_s26  }
 0x18b   : > { %p1169_p9 = scmp.le.s32.totalorder %s1893_s25, 0 }
 0x18c   : > { %s1509_s28 = smov (!%p1169_p9), %s856_s27   ;;  %s1513_s29 = smov (!%p1169_p9), %s854_s24  }
 0x18d   : > { %1053 = sbr.rel (%p1169_p9) target bundleno = 410 (0x19a), region = 213  ;;  %s1517_s30 = smov (!%p1169_p9), 0  }
 0x18e   : > { %s1521_s14 = smov (!%p1169_p9), 0  }
 0x192 LB: >> { %v866_v45 = vld [vmem:[%s1515_s29] sm:$0xf]  ;;  %s868_s5 = sadd.s32 1, %s1519_s30  ;;  %s860_s14 = sadd.s32 1, %s1523_s14   ;;  %s1523_s14 = sphi %s1521_s14, %s860_s14   ;;  %s1519_s30 = sphi %s1517_s30, %s1518_s30   ;;  %s1515_s29 = sphi %s1513_s29, %s873_s29   ;;  %s1511_s28 = sphi %s1509_s28, %s874_s28  }
 0x193   : >> { %867 = vst [vmem:[%s1511_s28] sm:$0xf] %v866_v45  ;;  %p869_p10 = scmp.ge.s32.totalorder %s868_s5, %s1893_s25  ;;  %p859_p11 = scmp.ge.s32.totalorder %s860_s14, %s1893_s25 }
 0x195   : >> { %s1938_s5 = smov (%p869_p10, %s868_s5), 0  ;;  %862 = sbr.rel (!%p859_p11) target bundleno = 402 (0x192), region = 219 }
 0x196   : >> { %s1170_s6 = sshll.u32 %s1938_s5, 2  ;;  %s1518_s30 = smov %s1938_s5  }
 0x197   : >> { %s873_s29 = scalar_lea.vmem %s854_s24, %s1170_s6 [#allocation3]   ;;  %s874_s28 = scalar_lea.vmem %s856_s27, %s1170_s6  }
 0x19a PF: > { %p10_p12 = scmp.ge.s32.totalorder %s1565_s16, 4   ;;  %s1924_s12 = smov %s1455_s13 }
 0x19b   : > { %s1925_s13 = smov %s1575_s19  ;;  %s1926_s14 = smov %s1565_s16 }
 0x19c   :  { %12 = sbr.rel (!%p10_p12) target bundleno = 2 (0x2), region = 230 }

// kernel: dropnet_forward.5
= control target key start
LH: loop header
LB: loop body
LE: loop exit
PB: predicated region body
PF: predicated region fallthrough
CT: control target
= control target key end

     0   :  { %v768_v1 = vmov 0   ;;  %v98_v20 = vlaneseq  ;;  %v769_v25 = vmov 1966171168   ;;  %vm421_vm0 = vcmask 1043456   ;;  %s970_s0 = inlined_call_operand.vmem [shape: bf16[2,400], index: 0, kind: input, shape index: {}]   ;;  %s971_s1 = inlined_call_operand.vmem [shape: bf16[400,120], index: 1, kind: input, shape index: {}]   ;;  %s972_s2 = inlined_call_operand.vmem [shape: f32[1,120], index: 2, kind: input, shape index: {}]   ;;  %s973_s3 = inlined_call_operand.vmem [shape: bf16[120,84], index: 3, kind: input, shape index: {}]   ;;  %s974_s4 = inlined_call_operand.vmem [shape: f32[1,84], index: 4, kind: input, shape index: {}]   ;;  %s975_s5 = inlined_call_operand.vmem [shape: bf16[84,10], index: 5, kind: input, shape index: {}]   ;;  %s976_s6 = inlined_call_operand.vmem [shape: f32[1,10], index: 6, kind: input, shape index: {}]   ;;  %s977_s7 = inlined_call_operand.hbm [shape: f32[2,10], index: 7, kind: output, shape index: {}]  }
   0x1   :  { %v707_v0 = vld [vmem:[%s971_s1 + $0x78] sm:$0xff]   ;;  %308 = vmatprep.subr.bf16.mxu1 %v768_v1  ;;  %v710_v4 = vld [vmem:[%s971_s1 + $0x70] sm:$0xff]   ;;  %v713_v7 = vld [vmem:[%s971_s1 + $0x68] sm:$0xff]   ;;  %v96_v26 = vunpack.c.l.s4 %v769_v25  ;;  %vm264_vm1 = vcmask 130048   ;;  %v770_v39 = vmov 0.0  }
   0x2   :  { %v708_v2 = vld [vmem:[%s971_s1 + $0xb8] sm:$0xff]   ;;  %628 = vmatprep.subr.bf16.mxu0 %v707_v0  ;;  %v711_v5 = vld [vmem:[%s971_s1 + $0xb0] sm:$0xff]   ;;  %v714_v8 = vld [vmem:[%s971_s1 + $0xa8] sm:$0xff]   ;;  %v99_v27 = vshrl.u32 %v98_v20, 7 }
   0x3   :  { %v709_v3 = vld [vmem:[%s971_s1 + $0x38] sm:$0xff]   ;;  %309 = vmatpush1.bf16.msra.mxu1 %v708_v2  ;;  %v712_v6 = vld [vmem:[%s971_s1 + $0x30] sm:$0xff]   ;;  %v715_v9 = vld [vmem:[%s971_s1 + $0x28] sm:$0xff]   ;;  %v97_v31 = vunpack.c.0.s8 %v96_v26 }
   0x4   :  { %629 = vmatpush3.bf16.msra.mxu0 %v709_v3  ;;  %310 = vmatprep.subr.bf16.mxu1 %v768_v1  ;;  %v716_v10 = vld [vmem:[%s971_s1 + $0x60] sm:$0xff]   ;;  %v719_v13 = vld [vmem:[%s971_s1 + $0x58] sm:$0xff]   ;;  %v722_v16 = vld [vmem:[%s971_s1 + $0x50] sm:$0xff]  }
   0x5   :  { %630 = vmatprep.subr.bf16.mxu0 %v710_v4  ;;  %v717_v11 = vld [vmem:[%s971_s1 + $0xa0] sm:$0xff]   ;;  %v720_v14 = vld [vmem:[%s971_s1 + $0x98] sm:$0xff]   ;;  %v723_v17 = vld [vmem:[%s971_s1 + $0x90] sm:$0xff]   ;;  %v100_v33 = vsub.s32 %v97_v31, %v99_v27 }
   0x6   :  { %v718_v12 = vld [vmem:[%s971_s1 + $0x20] sm:$0xff]   ;;  %v721_v15 = vld [vmem:[%s971_s1 + $0x18] sm:$0xff]   ;;  %v724_v18 = vld [vmem:[%s971_s1 + $0x10] sm:$0xff]  }
   0x7   :  { %311 = vmatpush1.bf16.msra.mxu1 %v711_v5  ;;  %v725_v19 = vld [vmem:[%s971_s1 + $0x48] sm:$0xff]   ;;  %v583_v23 = vld.sshfl [vmem:[%s970_s0] sm:$0x33 pattern:$0x75316420]  ;;  %v733_v41 = vld [vmem:[%s973_s3 + $0x30] sm:$0xff]  }
   0x8   :  { %631 = vmatpush3.bf16.msra.mxu0 %v712_v6  ;;  %312 = vmatprep.subr.bf16.mxu1 %v768_v1  ;;  %v726_v21 = vld [vmem:[%s971_s1 + $0x88] sm:$0xff]   ;;  %v728_v24 = vld [vmem:[%s971_s1 + $0x40] sm:$0xff]   ;;  %v732_v28 = vld [vmem:[%s973_s3 + $0x38] ss:$0 sps:$4 sm:$0xff]   ;;  %v94_v30 = vcombine.high %v583_v23, %v583_v23  ;;  %v101_v37 = vrot.slane %v583_v23, %v100_v33 }
   0x9   :  { %632 = vmatprep.subr.bf16.mxu0 %v713_v7  ;;  %v727_v22 = vld [vmem:[%s971_s1 + $0x8] sm:$0xff]   ;;  %v729_v29 = vld [vmem:[%s971_s1 + $0x80] sm:$0xff]   ;;  %v423_v35 = vsel %vm421_vm0, %v732_v28, 0 }
   0xa   :  { %v730_v32 = vld [vmem:[%s971_s1] sm:$0xff]   ;;  %v108_v36 = vrot.slane %v94_v30, %v100_v33  ;;  %v109_v40 = vcombine.high %v101_v37, %v101_v37 }
   0xb   :  { %313 = vmatpush1.bf16.msra.mxu1 %v714_v8  ;;  %v731_v34 = vld [vmem:[%s971_s1 + $0xc0] sm:$0xff]  }
   0xc   :  { %633 = vmatpush3.bf16.msra.mxu0 %v715_v9  ;;  %314 = vmatprep.subr.bf16.mxu1 %v768_v1  ;;  %v110_v38 = vcombine.high %v108_v36, %v108_v36 }
   0xd   :  { %634 = vmatprep.subr.bf16.mxu0 %v716_v10  ;;  %300 = vmatprep.mubr.bf16.mxu0 %v108_v36 }
   0xe   :  { %609 = vmatprep.mubr.msk.bf16.mxu1 %vm264_vm1, %v110_v38 }
   0xf   :  { %315 = vmatpush1.bf16.msra.mxu1 %v717_v11 }
  0x10   :  { %635 = vmatpush3.bf16.msra.mxu0 %v718_v12  ;;  %316 = vmatprep.subr.bf16.mxu1 %v768_v1 }
  0x11   :  { %636 = vmatprep.subr.bf16.mxu0 %v719_v13 }
  0x13   :  { %317 = vmatpush1.bf16.msra.mxu1 %v720_v14 }
  0x14   :  { %637 = vmatpush3.bf16.msra.mxu0 %v721_v15  ;;  %318 = vmatprep.subr.bf16.mxu1 %v768_v1 }
  0x15   :  { %638 = vmatprep.subr.bf16.mxu0 %v722_v16 }
  0x17   :  { %319 = vmatpush1.bf16.msra.mxu1 %v723_v17 }
  0x18   :  { %639 = vmatpush3.bf16.msra.mxu0 %v724_v18  ;;  %320 = vmatprep.subr.bf16.mxu1 %v768_v1 }
  0x19   :  { %640 = vmatprep.subr.bf16.mxu0 %v725_v19 }
  0x1b   :  { %321 = vmatpush1.bf16.msra.mxu1 %v726_v21 }
  0x1c   :  { %641 = vmatpush3.bf16.msra.mxu0 %v727_v22  ;;  %322 = vmatprep.subr.bf16.mxu1 %v768_v1 }
  0x1d   :  { %642 = vmatprep.subr.bf16.mxu0 %v728_v24 }
  0x1f   :  { %323 = vmatpush1.bf16.msra.mxu1 %v729_v29 }
  0x20   :  { %643 = vmatpush3.bf16.msra.mxu0 %v730_v32  ;;  %338 = vmatprep.subr.bf16.mxu1 %v768_v1 }
  0x21   :  { %666 = vmatprep.subr.bf16.mxu0 %v770_v39 }
  0x23   :  { %301 = vmatmul.mubr.bf16.vlgmr.msra.gmra.mxu0 %v101_v37  ;;  %339 = vmatpush2.bf16.msra.mxu1 %v731_v34 }
  0x24   :  { %667 = vmatpush3.bf16.msra.mxu0 %v423_v35 }
  0x25   :  { %12 = vsyncpa [#allocation3], 0  ;;  %668 = vmatprep.subr.bf16.mxu0 %v770_v39  ;;  %686 = vmatprep.subr.bf16.mxu1 %v770_v39  ;;  %v734_v42 = vld [vmem:[%s973_s3 + $0x28] sm:$0xff]   ;;  %v735_v43 = vld [vmem:[%s973_s3 + $0x20] sm:$0xff]   ;;  %vm771_vm2 = vmmov 0   ;;  %vm522_vm3 = vcmask 1041408  }
  0x26   :  { %341 = vmatmul.mubr.bf16.vlgmr.msra.gmra.mxu1 %v109_v40  ;;  %v736_v44 = vld [vmem:[%s973_s3 + $0x18] sm:$0xff]   ;;  %v737_v45 = vld [vmem:[%s973_s3 + $0x10] sm:$0xff]   ;;  %v738_v46 = vld [vmem:[%s973_s3 + $0x8] sm:$0xff]   ;;  %682 = vmatprep.mubr.msk.bf16.mxu0 %vm771_vm2, %v770_v39  ;;  %vm417_vm4 = vcmask 982016   ;;  %vm518_vm5 = vcmask 687104   ;;  %s772_s12 = smov [#allocation2]  }
  0x27   :  { %v739_v47 = vld [vmem:[%s973_s3] sm:$0xff]   ;;  %698 = vmatprep.mubr.msk.bf16.mxu1 %vm771_vm2, %v770_v39  ;;  %v740_v48 = vld [vmem:[%s975_s5 + $0x28] ss:$0 sps:$4 sm:$0x33]   ;;  %v742_v51 = vld [vmem:[%s975_s5 + $0x18] sm:$0xff]   ;;  %vm566_vm6 = vcmask 74752  }
  0x28   :  { %669 = vmatpush3.bf16.msra.mxu0 %v733_v41  ;;  %v524_v49 = vsel %vm522_vm3, %v740_v48, 0  ;;  %v741_v50 = vld [vmem:[%s975_s5 + $0x20] sm:$0xff]   ;;  %v743_v52 = vld [vmem:[%s975_s5 + $0x10] sm:$0xff]   ;;  %v744_v3 = vld [vmem:[%s975_s5 + $0x8] sm:$0xff]  }
  0x29   :  { %670 = vmatprep.subr.bf16.mxu0 %v770_v39  ;;  %687 = vmatpush3.bf16.msra.mxu1 %v524_v49  ;;  %v582_v55 = vld [vmem:[%s972_s2] ss:$0 sm:$0xff] }
  0x2a   :  { %688 = vmatprep.subr.bf16.mxu1 %v770_v39  ;;  %v745_v4 = vld [vmem:[%s975_s5] sm:$0xff]   ;;  %s574_s5 = sshll.u32 %s772_s12, 4  ;;  %s575_s5 = int_to_ptr.vmem [resolvable:$true] %s574_s5 }
  0x2b   :  { %v610_v5 = vld [vmem:[%s974_s4] ss:$0 sm:$0xff]  ;;  %s746_s4 = scalar_lea.vmem %s575_s5, 32  ;;  %p751_p1 = scmp.lt.s32.totalorder %s575_s5, %s575_s5 }
  0x2c   :  { %671 = vmatpush3.bf16.msra.mxu0 %v734_v42  ;;  %v620_v13 = vld [vmem:[%s976_s6] ss:$0 sm:$0xff]  ;;  %p747_p0 = scmp.ne.s32.totalorder %s575_s5, %s746_s4  ;;  %p752_p2 = scmp.lt.s32.totalorder %s746_s4, %s746_s4 }
  0x2d   :  { %672 = vmatprep.subr.bf16.mxu0 %v770_v39  ;;  %689 = vmatpush3.bf16.msra.mxu1 %v741_v50 }
  0x2e   :  { %690 = vmatprep.subr.bf16.mxu1 %v770_v39  ;;  %p753_p3 = por %p752_p2, %p751_p1 }
  0x30   :  { %673 = vmatpush3.bf16.msra.mxu0 %v735_v43  ;;  %p754_p4 = pnand %p753_p3, %p747_p0 }
  0x31   :  { %674 = vmatprep.subr.bf16.mxu0 %v770_v39  ;;  %691 = vmatpush3.bf16.msra.mxu1 %v742_v51 }
  0x32   :  { %692 = vmatprep.subr.bf16.mxu1 %v770_v39 }
  0x34   :  { %675 = vmatpush3.bf16.msra.mxu0 %v736_v44 }
  0x35   :  { %676 = vmatprep.subr.bf16.mxu0 %v770_v39  ;;  %693 = vmatpush3.bf16.msra.mxu1 %v743_v52 }
  0x36   :  { %694 = vmatprep.subr.bf16.mxu1 %v770_v39 }
  0x38   :  { %677 = vmatpush3.bf16.msra.mxu0 %v737_v45 }
  0x39   :  { %678 = vmatprep.subr.bf16.mxu0 %v770_v39  ;;  %695 = vmatpush3.bf16.msra.mxu1 %v744_v3 }
  0x3a   :  { %696 = vmatprep.subr.bf16.mxu1 %v770_v39 }
  0x3c   :  { %679 = vmatpush3.bf16.msra.mxu0 %v738_v46 }
  0x3d   :  { %680 = vmatprep.subr.bf16.mxu0 %v770_v39  ;;  %697 = vmatpush3.bf16.msra.mxu1 %v745_v4 }
  0x40   :  { %681 = vmatpush3.bf16.msra.mxu0 %v739_v47 }
  0xe3   :  { %v644_v53 = vpop.f32.mrf.mxu0 }
  0xe5   :  { %v645_v54 = vpop.f32.mrf.mxu0 }
  0xe6   :  { %v646_v56 = vadd.f32 %v645_v54, %v644_v53  ;;  %v342_v57 = vpop.f32.mrf.mxu1 }
  0xe7   :  { %v647_v58 = vpop.f32.mrf.mxu0 }
  0xe8   :  { %v303_v59 = vadd.f32 %v646_v56, %v582_v55  ;;  %v344_v60 = vpop.f32.mrf.mxu1 }
  0xe9   :  { %v648_v61 = vpop.f32.mrf.mxu0 }
  0xea   :  { %v343_v62 = vadd.f32 %v342_v57, %v303_v59  ;;  %v345_v63 = vpop.f32.mrf.mxu1 }
  0xec   :  { %v348_v0 = vmax.f32 %v343_v62, 0.0  ;;  %v346_v1 = vpop.f32.mrf.mxu1 }
  0xee   :  { %v349_v2 = vpack.c.bf16 %v348_v0, %v348_v0 }
  0xf0   :  { %683 = vmatmul.mubr.msk.bf16.vlgmr.msra.gmra.mxu0 %vm417_vm4, %v349_v2 }
 0x1b0   :  { %v459_v6 = vpop.f32.mrf.mxu0 }
 0x1b1   :  { %v460_v7 = vadd.f32 %v610_v5, %v459_v6 }
 0x1b2   :  { %v684_v8 = vpop.f32.mrf.mxu0 }
 0x1b3   :  { %v465_v9 = vmax.f32 %v460_v7, 0.0 }
 0x1b4   :  { %v462_v10 = vpop.f32.mrf.mxu0 }
 0x1b5   :  { %v466_v11 = vpack.c.bf16 %v465_v9, %v465_v9 }
 0x1b6   :  { %v685_v12 = vpop.f32.mrf.mxu0 }
 0x1b7   :  { %699 = vmatmul.mubr.msk.bf16.vlgmr.msra.gmra.mxu1 %vm518_vm5, %v466_v11 }
 0x277   :  { %v560_v14 = vpop.f32.mrf.mxu1 }
 0x278   :  { %v561_v15 = vadd.f32 %v620_v13, %v560_v14 }
 0x279   :  { %v700_v16 = vpop.f32.mrf.mxu1 }
 0x27a   :  { %567 = vst.msk [vmem:[#allocation2] sm:$0x3] %vm566_vm6, %v561_v15 }
 0x27b   :  { %v563_v17 = vpop.f32.mrf.mxu1 }
 0x27c   :  { %757 = shalt.err (!%p754_p4)
}
 0x27d   :  { %577 = dma.vmem_to_hbm [thread:$0]  %s575_s5, 32, %s977_s7, [#allocation3]   ;;  %v701_v18 = vpop.f32.mrf.mxu1 }
 0x27e   :  { %766 = dma.done.wait [#allocation3], 32  }
 0x27f   :  { %767 = vsyncadd [#allocation3], 4294967264 }
 0x280   :  { %581 = vsyncpa [#allocation3], 1 }

</bundles_post_ra>
